<compile_context>
chip_gen: v5e
topology: v5e:2x2
jax: 0.10.0
libtpu: 0.0.40
codegen_flags: <defaults>
</compile_context>

<pallas_src>
import functools

import jax
import jax.numpy as jnp
from jax import lax
from jax.experimental import pallas as pl
from jax.experimental.pallas import tpu as pltpu

KERNEL_MUL = 2.0
KERNEL_NUM = 5


def _round_up(x, k):
    return -(-x // k) * k


def _mmd_rbf_kernel(src_hbm, tgt_hbm, out_ref,
                    stage_s, stage_t, slab, sqn_c, acc, sem, *,
                    n, m, n_pad, tm, tn, d,
                    kernel_mul, kernel_num, fix_sigma, precision):
    i = pl.program_id(0)          # row-tile index  ("parallel")
    j = pl.program_id(1)          # col-tile index  ("arbitrary", accumulated)
    N = n + m

    # ---- once per row tile: DMA inputs, center, fold the bandwidth scale ----
    @pl.when(j == 0)
    def _prepare():
        cp_s = pltpu.make_async_copy(src_hbm, stage_s, sem.at[0])
        cp_t = pltpu.make_async_copy(tgt_hbm, stage_t, sem.at[1])
        cp_s.start()
        cp_t.start()
        cp_s.wait()
        cp_t.wait()

        xs = stage_s[...].astype(jnp.float32)                  # (n, d)
        xt = stage_t[...].astype(jnp.float32)                  # (m, d)

        # Center by the column mean of the real rows: L2 is translation
        # invariant, and centering removes the large-mean cancellation in both
        # the analytic bandwidth sum and the gram-based distances.
        mu = (jnp.sum(xs, axis=0, keepdims=True)
              + jnp.sum(xt, axis=0, keepdims=True)) * (1.0 / float(N))
        cs = xs - mu
        ct = xt - mu

        # bandwidth = sum(L2)/(N^2-N);  sum(L2) = 2*N*sum||c||^2 - 2*||sum c||^2
        if fix_sigma is not None:
            bw = jnp.float32(fix_sigma)
        else:
            sum_sq = jnp.sum(cs * cs) + jnp.sum(ct * ct)
            csum = (jnp.sum(cs, axis=0, keepdims=True)
                    + jnp.sum(ct, axis=0, keepdims=True))
            sum_l2 = 2.0 * float(N) * sum_sq - 2.0 * jnp.sum(csum * csum)
            bw = sum_l2 * (1.0 / float(N * N - N))
        bw = bw * (1.0 / (kernel_mul ** (kernel_num // 2)))

        # Fold the widest 1/bandwidth into the operands: with
        #   A = scale * (x - mu),  scale = sqrt(2 / widest)
        # the exp argument per tile is simply  sqn_i + sqn_j + A_i.A_j  (<= 0).
        if kernel_mul == 2.0:
            widest = bw * (2.0 ** (kernel_num - 1))
        else:
            widest = bw
        scale = jnp.sqrt(2.0 / widest)

        slab[pl.ds(0, n), :] = cs * scale
        slab[pl.ds(n, m), :] = ct * scale
        if n_pad > N:
            # Zero padded rows -> finite kernel values; they get weight 0 below.
            slab[pl.ds(N, n_pad - N), :] = jnp.zeros((n_pad - N, d), jnp.float32)

        sl = slab[...]
        sqn_c[...] = -0.5 * jnp.sum(sl * sl, axis=1, keepdims=True)  # (n_pad, 1)

        acc[0] = 0.0

    # ----------------------- per (row-tile, col-tile) ------------------------
    row0 = pl.multiple_of(i * tm, tm)
    col0 = pl.multiple_of(j * tn, tn)

    a_tile = slab[pl.ds(row0, tm), :]                                  # (tm, d)
    b_tile = slab[pl.ds(col0, tn), :]                                  # (tn, d)

    gram = lax.dot_general(a_tile, b_tile,
                           dimension_numbers=(((1,), (1,)), ((), ())),
                           preferred_element_type=jnp.float32,
                           precision=precision)                        # (tm, tn)

    sq_col = sqn_c[pl.ds(row0, tm), :]                                 # (tm, 1)
    # (1, tn) row of -0.5*||.||^2 without any transpose/relayout (MXU matvec).
    bsq = b_tile * b_tile
    ones_row = jnp.ones((1, d), jnp.float32)
    sq_row = -0.5 * lax.dot_general(ones_row, bsq,
                                    dimension_numbers=(((1,), (1,)), ((), ())),
                                    preferred_element_type=jnp.float32,
                                    precision=precision)               # (1, tn)

    arg = jnp.minimum(sq_col + sq_row + gram, 0.0)       # = -L2 / widest_bw

    if kernel_mul == 2.0:
        # exp(-L2/(bw*2^i)) = a^(2^(kn-1-i)) with a = exp(-L2/(bw*2^(kn-1)))
        # -> one exp pass + (kernel_num-1) VALU squarings.
        a = jnp.exp(arg)
        kern = a
        term = a
        for _ in range(kernel_num - 1):
            term = term * term
            kern = kern + term
    else:
        kern = jnp.zeros_like(arg)
        for p in range(kernel_num):
            kern = kern + jnp.exp(arg * (1.0 / kernel_mul ** p))

    # mean(XX)+mean(YY)-mean(XY)-mean(YX) == w^T K w, signed weights
    # w = +1/n (source rows), -1/m (target rows), 0 (padded rows).
    # K @ w_col runs on the idle MXU; only a (tm,1) VPU finish remains.
    ridx = row0 + lax.broadcasted_iota(jnp.int32, (tm, 1), 0)
    cidx = col0 + lax.broadcasted_iota(jnp.int32, (tn, 1), 0)
    w_row = jnp.where(ridx < n, 1.0 / n,
                      jnp.where(ridx < N, -1.0 / m, 0.0)).astype(jnp.float32)
    w_col = jnp.where(cidx < n, 1.0 / n,
                      jnp.where(cidx < N, -1.0 / m, 0.0)).astype(jnp.float32)

    kw = lax.dot_general(kern, w_col,
                         dimension_numbers=(((1,), (0,)), ((), ())),
                         preferred_element_type=jnp.float32,
                         precision=precision)                          # (tm, 1)

    acc[0] += jnp.sum(w_row * kw)
    # Write the running per-row-tile partial every step (block is revisited
    # across j); the host sums the n_i partials.
    out_ref[...] = jnp.full((1, 8, 128), acc[0], jnp.float32)


def mmd_loss(source, target, kernel_mul=KERNEL_MUL, kernel_num=KERNEL_NUM,
             fix_sigma=None, precision=lax.Precision.HIGHEST):
    """RBF MMD loss (MMDLoss.forward with kernel_type='rbf')."""
    # TODO(synk): kernel_type='linear' branch (linear_mmd2) not implemented;
    #             the module's default (and only exercised) path is 'rbf'.
    # NOTE: `precision` defaults to HIGHEST to stay ~f32-exact on the exp
    #       arguments; on v5e with large D, lax.Precision.DEFAULT cuts MXU work
    #       3-6x at a small accuracy cost (per review).
    n, d = source.shape
    m, d2 = target.shape
    assert d == d2, "source/target feature dims must match"
    assert source.dtype == target.dtype, "source/target dtypes must match"
    N = n + m

    # Tile the implicit (N, N) kernel matrix; keep the (N, D) slab resident.
    n_pad = _round_up(N, 128)
    tn = max(t for t in (512, 384, 256, 128) if n_pad % t == 0)
    tm = max(t for t in (256, 128) if n_pad % t == 0)
    n_i = n_pad // tm
    n_j = n_pad // tn

    kern = functools.partial(
        _mmd_rbf_kernel, n=n, m=m, n_pad=n_pad, tm=tm, tn=tn, d=d,
        kernel_mul=float(kernel_mul), kernel_num=int(kernel_num),
        fix_sigma=fix_sigma, precision=precision)

    # Generous VMEM estimate, capped at ~85% of the physical per-core VMEM.
    in_bytes = jnp.dtype(source.dtype).itemsize
    est_bytes = (
        (n + m) * d * in_bytes          # raw staging buffers
        + n_pad * d * 4                 # centered/scaled slab
        + 4 * N * d * 4                 # preprocess temporaries
        + n_pad * 128 * 4               # sqn_c (lane-padded)
        + 8 * tm * tn * 4               # live (tm, tn) temporaries
        + 3 * (tm + tn) * d * 4         # tile views / b*b
        + 2 * 8 * 128 * 4               # double-buffered output block
        + (8 << 20))                    # headroom
    try:
        vmem_cap = int(pltpu.get_tpu_info().vmem_capacity_bytes)
    except Exception:
        vmem_cap = 64 << 20             # conservative fallback (v7x per-core)
    vmem_limit = min(max(est_bytes, 32 << 20), int(0.85 * vmem_cap))
    # TODO(synk): if the (N, D) slab itself no longer fits (huge N*D), it would
    #             have to be streamed from HBM per tile instead of kept resident.

    out = pl.pallas_call(
        kern,
        out_shape=jax.ShapeDtypeStruct((n_i, 8, 128), jnp.float32),
        grid=(n_i, n_j),
        in_specs=[pl.BlockSpec(memory_space=pl.ANY),     # source stays in HBM
                  pl.BlockSpec(memory_space=pl.ANY)],    # target stays in HBM
        out_specs=pl.BlockSpec((1, 8, 128), lambda i, j: (i, 0, 0)),
        scratch_shapes=[
            pltpu.VMEM((n, d), source.dtype),            # source staging
            pltpu.VMEM((m, d), target.dtype),            # target staging
            pltpu.VMEM((n_pad, d), jnp.float32),         # centered*scaled slab
            pltpu.VMEM((n_pad, 1), jnp.float32),         # -0.5*||row||^2
            pltpu.SMEM((1,), jnp.float32),               # per-row-tile partial
            pltpu.SemaphoreType.DMA((2,)),
        ],
        compiler_params=pltpu.CompilerParams(
            dimension_semantics=("parallel", "arbitrary"),
            vmem_limit_bytes=vmem_limit),
    )(source, target)
    return jnp.sum(out[:, 0, 0])


# ----------------------------- pure-JAX reference -----------------------------

def mmd_loss_ref(source, target, kernel_mul=KERNEL_MUL, kernel_num=KERNEL_NUM,
                 fix_sigma=None):
    n = source.shape[0]
    total = jnp.concatenate([source, target], axis=0).astype(jnp.float32)
    N = total.shape[0]
    d2 = jnp.sum((total[None, :, :] - total[:, None, :]) ** 2, axis=-1)
    if fix_sigma is not None:
        bw = jnp.float32(fix_sigma)
    else:
        bw = jnp.sum(d2) / (N * N - N)
    bw = bw / (kernel_mul ** (kernel_num // 2))
    kern = sum(jnp.exp(-d2 / (bw * kernel_mul ** i)) for i in range(kernel_num))
    return (jnp.mean(kern[:n, :n]) + jnp.mean(kern[n:, n:])
            - jnp.mean(kern[:n, n:]) - jnp.mean(kern[n:, :n]))


if __name__ == "__main__":
    batch, feat = 8, 32
    key = jax.random.PRNGKey(0)
    ks, kt = jax.random.split(key)
    source = jax.random.normal(ks, (batch, feat), jnp.float32)
    target = jax.random.normal(kt, (batch, feat), jnp.float32) + 0.5

    loss = mmd_loss(source, target)
    jax.block_until_ready(loss)

    ref = mmd_loss_ref(source, target)
    assert jnp.allclose(loss, ref, rtol=1e-4, atol=1e-4), (loss, ref)

    print("KERNEL_OK")
</pallas_src>

<mosaic_0001>
module attributes {stable_mosaic.version = 11 : i64} {
  func.func @_mmd_rbf_kernel(%arg0: i32, %arg1: i32, %arg2: memref<8x32xf32, #tpu.memory_space<any>>, %arg3: memref<8x32xf32, #tpu.memory_space<any>>, %arg4: memref<1x8x128xf32, #tpu.memory_space<vmem>>, %arg5: memref<8x32xf32, #tpu.memory_space<vmem>>, %arg6: memref<8x32xf32, #tpu.memory_space<vmem>>, %arg7: memref<128x32xf32, #tpu.memory_space<vmem>>, %arg8: memref<128x1xf32, #tpu.memory_space<vmem>>, %arg9: memref<1xf32, #tpu.memory_space<smem>>, %arg10: memref<2x!tpu.dma_semaphore, #tpu.memory_space<semaphore_mem>>) attributes {dimension_semantics = [#tpu.dimension_semantics<parallel>, #tpu.dimension_semantics<arbitrary>], iteration_bounds = array<i64: 1, 1>, scalar_prefetch = 0 : i64, scratch_operands = 6 : i64, tpu.core_type = #tpu.core_type<tc>, window_params = [{}, {}, {transform_indices = @transform_2, window_bounds = array<i64: 1, 8, 128>}]} {
    %c0_i32 = arith.constant 0 : i32
    %0 = arith.cmpi eq, %arg1, %c0_i32 : i32
    %1 = arith.extui %0 : i1 to i32
    %c0_i32_0 = arith.constant 0 : i32
    %2 = arith.cmpi ne, %1, %c0_i32_0 : i32
    scf.if %2 {
      %c0_i32_24 = arith.constant 0 : i32
      %70 = tpu.memref_slice %arg10[%c0_i32_24] : memref<2x!tpu.dma_semaphore, #tpu.memory_space<semaphore_mem>> -> memref<1x!tpu.dma_semaphore, #tpu.memory_space<semaphore_mem>>
      %71 = tpu.memref_squeeze %70 : memref<1x!tpu.dma_semaphore, #tpu.memory_space<semaphore_mem>> -> memref<!tpu.dma_semaphore, #tpu.memory_space<semaphore_mem>>
      tpu.enqueue_dma source(%arg2 : memref<8x32xf32, #tpu.memory_space<any>>) target(%arg5 : memref<8x32xf32, #tpu.memory_space<vmem>>) target_semaphore(%71 : memref<!tpu.dma_semaphore, #tpu.memory_space<semaphore_mem>>)
      %c1_i32 = arith.constant 1 : i32
      %72 = tpu.memref_slice %arg10[%c1_i32] : memref<2x!tpu.dma_semaphore, #tpu.memory_space<semaphore_mem>> -> memref<1x!tpu.dma_semaphore, #tpu.memory_space<semaphore_mem>>
      %73 = tpu.memref_squeeze %72 : memref<1x!tpu.dma_semaphore, #tpu.memory_space<semaphore_mem>> -> memref<!tpu.dma_semaphore, #tpu.memory_space<semaphore_mem>>
      tpu.enqueue_dma source(%arg3 : memref<8x32xf32, #tpu.memory_space<any>>) target(%arg6 : memref<8x32xf32, #tpu.memory_space<vmem>>) target_semaphore(%73 : memref<!tpu.dma_semaphore, #tpu.memory_space<semaphore_mem>>)
      %c0_i32_25 = arith.constant 0 : i32
      %74 = tpu.memref_slice %arg10[%c0_i32_25] : memref<2x!tpu.dma_semaphore, #tpu.memory_space<semaphore_mem>> -> memref<1x!tpu.dma_semaphore, #tpu.memory_space<semaphore_mem>>
      %75 = tpu.memref_squeeze %74 : memref<1x!tpu.dma_semaphore, #tpu.memory_space<semaphore_mem>> -> memref<!tpu.dma_semaphore, #tpu.memory_space<semaphore_mem>>
      tpu.wait_dma2 semaphore(%75 : memref<!tpu.dma_semaphore, #tpu.memory_space<semaphore_mem>>) src(%arg2 : memref<8x32xf32, #tpu.memory_space<any>>) dst(%arg5 : memref<8x32xf32, #tpu.memory_space<vmem>>)
      %c1_i32_26 = arith.constant 1 : i32
      %76 = tpu.memref_slice %arg10[%c1_i32_26] : memref<2x!tpu.dma_semaphore, #tpu.memory_space<semaphore_mem>> -> memref<1x!tpu.dma_semaphore, #tpu.memory_space<semaphore_mem>>
      %77 = tpu.memref_squeeze %76 : memref<1x!tpu.dma_semaphore, #tpu.memory_space<semaphore_mem>> -> memref<!tpu.dma_semaphore, #tpu.memory_space<semaphore_mem>>
      tpu.wait_dma2 semaphore(%77 : memref<!tpu.dma_semaphore, #tpu.memory_space<semaphore_mem>>) src(%arg3 : memref<8x32xf32, #tpu.memory_space<any>>) dst(%arg6 : memref<8x32xf32, #tpu.memory_space<vmem>>)
      %c0_27 = arith.constant 0 : index
      %c0_28 = arith.constant 0 : index
      %78 = vector.load %arg5[%c0_27, %c0_28] : memref<8x32xf32, #tpu.memory_space<vmem>>, vector<8x32xf32>
      %c0_29 = arith.constant 0 : index
      %c0_30 = arith.constant 0 : index
      %79 = vector.load %arg6[%c0_29, %c0_30] : memref<8x32xf32, #tpu.memory_space<vmem>>, vector<8x32xf32>
      %cst_31 = arith.constant dense<0.000000e+00> : vector<32xf32>
      %80 = vector.multi_reduction <add>, %78, %cst_31 [0] : vector<8x32xf32> to vector<32xf32>
      %81 = vector.shape_cast %80 : vector<32xf32> to vector<1x32xf32>
      %cst_32 = arith.constant dense<0.000000e+00> : vector<32xf32>
      %82 = vector.multi_reduction <add>, %79, %cst_32 [0] : vector<8x32xf32> to vector<32xf32>
      %83 = vector.shape_cast %82 : vector<32xf32> to vector<1x32xf32>
      %84 = arith.addf %81, %83 : vector<1x32xf32>
      %cst_33 = arith.constant 6.250000e-02 : f32
      %85 = vector.broadcast %cst_33 : f32 to vector<1x32xf32>
      %86 = arith.mulf %84, %85 : vector<1x32xf32>
      %87 = vector.broadcast %86 : vector<1x32xf32> to vector<8x32xf32>
      %88 = arith.subf %78, %87 : vector<8x32xf32>
      %89 = vector.broadcast %86 : vector<1x32xf32> to vector<8x32xf32>
      %90 = arith.subf %79, %89 : vector<8x32xf32>
      %91 = arith.mulf %88, %88 : vector<8x32xf32>
      %92 = vector.shape_cast %91 : vector<8x32xf32> to vector<1x8x32xf32>
      %cst_34 = arith.constant dense<0.000000e+00> : vector<1xf32>
      %93 = vector.multi_reduction <add>, %92, %cst_34 [1, 2] : vector<1x8x32xf32> to vector<1xf32>
      %94 = vector.shape_cast %93 : vector<1xf32> to vector<1x1x1xf32>
      %95 = vector.extract %94[0, 0, 0] : f32 from vector<1x1x1xf32>
      %96 = arith.mulf %90, %90 : vector<8x32xf32>
      %97 = vector.shape_cast %96 : vector<8x32xf32> to vector<1x8x32xf32>
      %cst_35 = arith.constant dense<0.000000e+00> : vector<1xf32>
      %98 = vector.multi_reduction <add>, %97, %cst_35 [1, 2] : vector<1x8x32xf32> to vector<1xf32>
      %99 = vector.shape_cast %98 : vector<1xf32> to vector<1x1x1xf32>
      %100 = vector.extract %99[0, 0, 0] : f32 from vector<1x1x1xf32>
      %101 = arith.addf %95, %100 : f32
      %cst_36 = arith.constant dense<0.000000e+00> : vector<32xf32>
      %102 = vector.multi_reduction <add>, %88, %cst_36 [0] : vector<8x32xf32> to vector<32xf32>
      %103 = vector.shape_cast %102 : vector<32xf32> to vector<1x32xf32>
      %cst_37 = arith.constant dense<0.000000e+00> : vector<32xf32>
      %104 = vector.multi_reduction <add>, %90, %cst_37 [0] : vector<8x32xf32> to vector<32xf32>
      %105 = vector.shape_cast %104 : vector<32xf32> to vector<1x32xf32>
      %106 = arith.addf %103, %105 : vector<1x32xf32>
      %cst_38 = arith.constant 3.200000e+01 : f32
      %107 = arith.mulf %cst_38, %101 : f32
      %108 = arith.mulf %106, %106 : vector<1x32xf32>
      %109 = vector.shape_cast %108 : vector<1x32xf32> to vector<1x1x32xf32>
      %cst_39 = arith.constant dense<0.000000e+00> : vector<1xf32>
      %110 = vector.multi_reduction <add>, %109, %cst_39 [1, 2] : vector<1x1x32xf32> to vector<1xf32>
      %111 = vector.shape_cast %110 : vector<1xf32> to vector<1x1x1xf32>
      %112 = vector.extract %111[0, 0, 0] : f32 from vector<1x1x1xf32>
      %cst_40 = arith.constant 2.000000e+00 : f32
      %113 = arith.mulf %cst_40, %112 : f32
      %114 = arith.subf %107, %113 : f32
      %cst_41 = arith.constant 0.00416666688 : f32
      %115 = arith.mulf %114, %cst_41 : f32
      %cst_42 = arith.constant 2.500000e-01 : f32
      %116 = arith.mulf %115, %cst_42 : f32
      %cst_43 = arith.constant 1.600000e+01 : f32
      %117 = arith.mulf %116, %cst_43 : f32
      %cst_44 = arith.constant 2.000000e+00 : f32
      %118 = arith.divf %cst_44, %117 : f32
      %119 = math.sqrt %118 : f32
      %120 = vector.broadcast %119 : f32 to vector<8x32xf32>
      %121 = arith.mulf %88, %120 : vector<8x32xf32>
      %c0_45 = arith.constant 0 : index
      %c0_46 = arith.constant 0 : index
      %122 = vector.load %arg7[%c0_45, %c0_46] : memref<128x32xf32, #tpu.memory_space<vmem>>, vector<8x32xf32>
      tpu.vector_store %arg7[%c0_45, %c0_46], %121 {strides = array<i32>} : memref<128x32xf32, #tpu.memory_space<vmem>>, vector<8x32xf32>,
      %123 = vector.broadcast %119 : f32 to vector<8x32xf32>
      %124 = arith.mulf %90, %123 : vector<8x32xf32>
      %c8 = arith.constant 8 : index
      %c0_47 = arith.constant 0 : index
      %125 = vector.load %arg7[%c8, %c0_47] : memref<128x32xf32, #tpu.memory_space<vmem>>, vector<8x32xf32>
      tpu.vector_store %arg7[%c8, %c0_47], %124 {strides = array<i32>} : memref<128x32xf32, #tpu.memory_space<vmem>>, vector<8x32xf32>,
      %cst_48 = arith.constant 0.000000e+00 : f32
      %126 = vector.broadcast %cst_48 : f32 to vector<112x32xf32>
      %c16 = arith.constant 16 : index
      %c0_49 = arith.constant 0 : index
      %127 = vector.load %arg7[%c16, %c0_49] : memref<128x32xf32, #tpu.memory_space<vmem>>, vector<112x32xf32>
      tpu.vector_store %arg7[%c16, %c0_49], %126 {strides = array<i32>} : memref<128x32xf32, #tpu.memory_space<vmem>>, vector<112x32xf32>,
      %c0_50 = arith.constant 0 : index
      %c0_51 = arith.constant 0 : index
      %128 = vector.load %arg7[%c0_50, %c0_51] : memref<128x32xf32, #tpu.memory_space<vmem>>, vector<128x32xf32>
      %129 = arith.mulf %128, %128 : vector<128x32xf32>
      %cst_52 = arith.constant dense<0.000000e+00> : vector<128xf32>
      %130 = vector.multi_reduction <add>, %129, %cst_52 [1] : vector<128x32xf32> to vector<128xf32>
      %131 = vector.shape_cast %130 : vector<128xf32> to vector<128x1xf32>
      %cst_53 = arith.constant -5.000000e-01 : f32
      %132 = vector.broadcast %cst_53 : f32 to vector<128x1xf32>
      %133 = arith.mulf %132, %131 : vector<128x1xf32>
      %c0_54 = arith.constant 0 : index
      %c0_55 = arith.constant 0 : index
      %134 = vector.load %arg8[%c0_54, %c0_55] : memref<128x1xf32, #tpu.memory_space<vmem>>, vector<128x1xf32>
      tpu.vector_store %arg8[%c0_54, %c0_55], %133 {strides = array<i32>} : memref<128x1xf32, #tpu.memory_space<vmem>>, vector<128x1xf32>,
      %cst_56 = arith.constant 0.000000e+00 : f32
      %c0_57 = arith.constant 0 : index
      %135 = memref.load %arg9[%c0_57] : memref<1xf32, #tpu.memory_space<smem>>
      memref.store %cst_56, %arg9[%c0_57] : memref<1xf32, #tpu.memory_space<smem>>
    } else {
    }
    %c128_i32 = arith.constant 128 : i32
    %3 = arith.muli %arg0, %c128_i32 : i32
    %4 = tpu.assume_multiple %3, 128 : i32
    %c128_i32_1 = arith.constant 128 : i32
    %5 = arith.muli %arg1, %c128_i32_1 : i32
    %6 = tpu.assume_multiple %5, 128 : i32
    %7 = arith.index_cast %4 : i32 to index
    %c0 = arith.constant 0 : index
    %8 = vector.load %arg7[%7, %c0] : memref<128x32xf32, #tpu.memory_space<vmem>>, vector<128x32xf32>
    %9 = arith.index_cast %6 : i32 to index
    %c0_2 = arith.constant 0 : index
    %10 = vector.load %arg7[%9, %c0_2] : memref<128x32xf32, #tpu.memory_space<vmem>>, vector<128x32xf32>
    %cst = arith.constant dense<0.000000e+00> : vector<128x128xf32>
    %11 = tpu.matmul %8, %10, %cst {dimension_numbers = #tpu.dot_dimension_numbers<[1], [1], [0], [0], [0, 0, 1, 0], [], []>, precision = #tpu.contract_precision<fp32>} : vector<128x32xf32>, vector<128x32xf32>, vector<128x128xf32> -> vector<128x128xf32>
    %12 = arith.index_cast %4 : i32 to index
    %c0_3 = arith.constant 0 : index
    %13 = vector.load %arg8[%12, %c0_3] : memref<128x1xf32, #tpu.memory_space<vmem>>, vector<128x1xf32>
    %14 = arith.mulf %10, %10 : vector<128x32xf32>
    %cst_4 = arith.constant 1.000000e+00 : f32
    %15 = vector.broadcast %cst_4 : f32 to vector<1x32xf32>
    %cst_5 = arith.constant dense<0.000000e+00> : vector<1x128xf32>
    %16 = tpu.matmul %15, %14, %cst_5 {dimension_numbers = #tpu.dot_dimension_numbers<[1], [1], [0], [0], [0, 0, 1, 0], [], []>, precision = #tpu.contract_precision<fp32>} : vector<1x32xf32>, vector<128x32xf32>, vector<1x128xf32> -> vector<1x128xf32>
    %cst_6 = arith.constant -5.000000e-01 : f32
    %17 = vector.broadcast %cst_6 : f32 to vector<1x128xf32>
    %18 = arith.mulf %17, %16 : vector<1x128xf32>
    %19 = vector.broadcast %13 : vector<128x1xf32> to vector<128x128xf32>
    %20 = vector.broadcast %18 : vector<1x128xf32> to vector<128x128xf32>
    %21 = arith.addf %19, %20 : vector<128x128xf32>
    %22 = arith.addf %21, %11 : vector<128x128xf32>
    %cst_7 = arith.constant 0.000000e+00 : f32
    %23 = vector.broadcast %cst_7 : f32 to vector<128x128xf32>
    %24 = arith.minimumf %22, %23 : vector<128x128xf32>
    %25 = math.exp %24 : vector<128x128xf32>
    %26 = arith.mulf %25, %25 : vector<128x128xf32>
    %27 = arith.addf %25, %26 : vector<128x128xf32>
    %28 = arith.mulf %26, %26 : vector<128x128xf32>
    %29 = arith.addf %27, %28 : vector<128x128xf32>
    %30 = arith.mulf %28, %28 : vector<128x128xf32>
    %31 = arith.addf %29, %30 : vector<128x128xf32>
    %32 = arith.mulf %30, %30 : vector<128x128xf32>
    %33 = arith.addf %31, %32 : vector<128x128xf32>
    %34 = tpu.iota {dimensions = array<i32: 0>} : vector<128x1xi32>
    %35 = vector.broadcast %4 : i32 to vector<128x1xi32>
    %36 = arith.addi %35, %34 : vector<128x1xi32>
    %37 = tpu.iota {dimensions = array<i32: 0>} : vector<128x1xi32>
    %38 = vector.broadcast %6 : i32 to vector<128x1xi32>
    %39 = arith.addi %38, %37 : vector<128x1xi32>
    %c8_i32 = arith.constant 8 : i32
    %40 = vector.broadcast %c8_i32 : i32 to vector<128x1xi32>
    %41 = arith.cmpi slt, %36, %40 : vector<128x1xi32>
    %c16_i32 = arith.constant 16 : i32
    %42 = vector.broadcast %c16_i32 : i32 to vector<128x1xi32>
    %43 = arith.cmpi slt, %36, %42 : vector<128x1xi32>
    %cst_8 = arith.constant -1.250000e-01 : f32
    %cst_9 = arith.constant 0.000000e+00 : f32
    %44 = vector.broadcast %cst_8 : f32 to vector<128x1xf32>
    %45 = vector.broadcast %cst_9 : f32 to vector<128x1xf32>
    %46 = arith.select %43, %44, %45 : vector<128x1xi1>, vector<128x1xf32>
    %cst_10 = arith.constant 1.250000e-01 : f32
    %47 = vector.broadcast %cst_10 : f32 to vector<128x1xf32>
    %48 = arith.select %41, %47, %46 : vector<128x1xi1>, vector<128x1xf32>
    %c8_i32_11 = arith.constant 8 : i32
    %49 = vector.broadcast %c8_i32_11 : i32 to vector<128x1xi32>
    %50 = arith.cmpi slt, %39, %49 : vector<128x1xi32>
    %c16_i32_12 = arith.constant 16 : i32
    %51 = vector.broadcast %c16_i32_12 : i32 to vector<128x1xi32>
    %52 = arith.cmpi slt, %39, %51 : vector<128x1xi32>
    %cst_13 = arith.constant -1.250000e-01 : f32
    %cst_14 = arith.constant 0.000000e+00 : f32
    %53 = vector.broadcast %cst_13 : f32 to vector<128x1xf32>
    %54 = vector.broadcast %cst_14 : f32 to vector<128x1xf32>
    %55 = arith.select %52, %53, %54 : vector<128x1xi1>, vector<128x1xf32>
    %cst_15 = arith.constant 1.250000e-01 : f32
    %56 = vector.broadcast %cst_15 : f32 to vector<128x1xf32>
    %57 = arith.select %50, %56, %55 : vector<128x1xi1>, vector<128x1xf32>
    %cst_16 = arith.constant dense<0.000000e+00> : vector<128x1xf32>
    %58 = tpu.matmul %33, %57, %cst_16 {dimension_numbers = #tpu.dot_dimension_numbers<[1], [0], [0], [1], [0, 0, 1, 1], [], []>, precision = #tpu.contract_precision<fp32>} : vector<128x128xf32>, vector<128x1xf32>, vector<128x1xf32> -> vector<128x1xf32>
    %c0_17 = arith.constant 0 : index
    %59 = memref.load %arg9[%c0_17] : memref<1xf32, #tpu.memory_space<smem>>
    %60 = arith.mulf %48, %58 : vector<128x1xf32>
    %61 = vector.shape_cast %60 : vector<128x1xf32> to vector<1x128x1xf32>
    %cst_18 = arith.constant dense<0.000000e+00> : vector<1xf32>
    %62 = vector.multi_reduction <add>, %61, %cst_18 [1, 2] : vector<1x128x1xf32> to vector<1xf32>
    %63 = vector.shape_cast %62 : vector<1xf32> to vector<1x1x1xf32>
    %64 = vector.extract %63[0, 0, 0] : f32 from vector<1x1x1xf32>
    %65 = arith.addf %59, %64 : f32
    %c0_19 = arith.constant 0 : index
    %66 = memref.load %arg9[%c0_19] : memref<1xf32, #tpu.memory_space<smem>>
    memref.store %65, %arg9[%c0_19] : memref<1xf32, #tpu.memory_space<smem>>
    %c0_20 = arith.constant 0 : index
    %67 = memref.load %arg9[%c0_20] : memref<1xf32, #tpu.memory_space<smem>>
    %68 = vector.broadcast %67 : f32 to vector<1x8x128xf32>
    %c0_21 = arith.constant 0 : index
    %c0_22 = arith.constant 0 : index
    %c0_23 = arith.constant 0 : index
    %69 = vector.load %arg4[%c0_21, %c0_22, %c0_23] : memref<1x8x128xf32, #tpu.memory_space<vmem>>, vector<1x8x128xf32>
    tpu.vector_store %arg4[%c0_21, %c0_22, %c0_23], %68 {strides = array<i32>} : memref<1x8x128xf32, #tpu.memory_space<vmem>>, vector<1x8x128xf32>,
    return
  }
  func.func @transform_2(%arg0: i32, %arg1: i32) -> (i32, i32, i32) {
    %c0_i32 = arith.constant 0 : i32
    %c0_i32_0 = arith.constant 0 : i32
    %c0_i32_1 = arith.constant 0 : i32
    return %arg0, %c0_i32, %c0_i32_0 : i32, i32, i32
  }
}

</mosaic_0001>

<bundles_post_ra>
// kernel: tpu_custom_call.1
= control target key start
LH: loop header
LB: loop body
LE: loop exit
PB: predicated region body
PF: predicated region fallthrough
CT: control target
= control target key end

     0   :  { %7 = vsyncpa [#allocation9], 0  ;;  %s3067_s12 = smov [#allocation2]   ;;  %s3068_s17 = smov [#allocation3]   ;;  %s4533_s0 = inlined_call_operand.hbm [shape: f32[8,32], index: 0, kind: input, shape index: {}]   ;;  %s4534_s1 = inlined_call_operand.hbm [shape: f32[8,32], index: 1, kind: input, shape index: {}]   ;;  %s4535_s2 = inlined_call_operand.hbm [shape: f32[1,8,128], index: 2, kind: output, shape index: {}]  }
   0x1   :  { %s19_s11 = sshll.u32 %s4533_s0, 4  ;;  %s21_s13 = sshll.u32 %s3067_s12, 4  ;;  %s20_s11 = int_to_ptr.hbm [resolvable:$true] %s19_s11  ;;  %s22_s13 = int_to_ptr.vmem [resolvable:$true] %s21_s13 }
   0x2   :  { %s33_s16 = sshll.u32 %s4534_s1, 4  ;;  %s35_s18 = sshll.u32 %s3068_s17, 4  ;;  %s34_s16 = int_to_ptr.hbm [resolvable:$true] %s33_s16  ;;  %s36_s18 = int_to_ptr.vmem [resolvable:$true] %s35_s18 }
   0x3   :  { %24 = dma.hbm_to_vmem [thread:$0]  %s20_s11, 128, %s22_s13, [#allocation7] }
   0x4   :  { %38 = dma.hbm_to_vmem [thread:$0]  %s34_s16, 128, %s36_s18, [#allocation7 + $0x1] }
   0x5   :  { %3061 = dma.done.wait [#allocation7], 128 }
   0x6   :  { %3062 = vsyncadd [#allocation7], 4294967168 }
   0x7   :  { %3063 = dma.done.wait [#allocation7 + $0x1], 128 }
   0x8   :  { %3064 = vsyncadd [#allocation7 + $0x1], 4294967168  ;;  %vm46_vm0 = vcmask 261120   ;;  %v44_v0 = vld [vmem:[#allocation2] sm:$0xff]  ;;  %v45_v1 = vld [vmem:[#allocation3] sm:$0xff]  ;;  %vm105_vm1 = vcmask 253952  }
   0x9   :  { %v47_v2 = vsel %vm46_vm0, %v44_v0, 0.0  ;;  %v54_v3 = vsel %vm46_vm0, %v45_v1, 0.0  ;;  %v4537_v41 = vmov 0.0   ;;  %vm267_vm6 = vcmask 7168   ;;  %s2900_s4 = sshll.u32 %s4535_s2, 4  ;;  %s3074_s5 = smov [#allocation8]   ;;  %s2901_s4 = int_to_ptr.hbm [resolvable:$true] %s2900_s4 }
   0xa   :  { %v48_v4 = vrot.slane %v47_v2, 4  ;;  %v55_v5 = vrot.slane %v54_v3, 4  ;;  %160 = vst.msk [vmem:[#allocation4 + $0x28] sm:$0xff] %vm46_vm0, %v4537_v41  ;;  %s2898_s6 = sshll.u32 %s3074_s5, 4  ;;  %s2899_s6 = int_to_ptr.vmem [resolvable:$true] %s2898_s6 }
   0xb   :  { %157 = vst.msk [vmem:[#allocation4 + $0x10] sm:$0xff] %vm46_vm0, %v4537_v41 }
   0xc   :  { %v49_v6 = vadd.f32 %v48_v4, %v47_v2  ;;  %v56_v7 = vadd.f32 %v55_v5, %v54_v3  ;;  %158 = vst.msk [vmem:[#allocation4 + $0x18] sm:$0xff] %vm46_vm0, %v4537_v41 }
   0xd   :  { %159 = vst.msk [vmem:[#allocation4 + $0x20] sm:$0xff] %vm46_vm0, %v4537_v41 }
   0xe   :  { %v50_v8 = vrot.slane %v49_v6, 2  ;;  %v57_v9 = vrot.slane %v56_v7, 2  ;;  %161 = vst.msk [vmem:[#allocation4 + $0x30] sm:$0xff] %vm46_vm0, %v4537_v41 }
   0xf   :  { %162 = vst.msk [vmem:[#allocation4 + $0x38] sm:$0xff] %vm46_vm0, %v4537_v41 }
  0x10   :  { %v51_v10 = vadd.f32 %v50_v8, %v49_v6  ;;  %v58_v11 = vadd.f32 %v57_v9, %v56_v7  ;;  %163 = vst.msk [vmem:[#allocation4 + $0x40] sm:$0xff] %vm46_vm0, %v4537_v41 }
  0x11   :  { %v3126_v45 = vld [vmem:[#allocation4 + $0x28] sm:$0xff]  ;;  %164 = vst.msk [vmem:[#allocation4 + $0x48] sm:$0xff] %vm46_vm0, %v4537_v41 }
  0x12   :  { %v52_v12 = vrot.slane %v51_v10, 1  ;;  %v59_v13 = vrot.slane %v58_v11, 1  ;;  %v3132_v47 = vmul.f32 %v3126_v45, %v3126_v45  ;;  %165 = vst.msk [vmem:[#allocation4 + $0x50] sm:$0xff] %vm46_vm0, %v4537_v41 }
  0x13   :  { %166 = vst.msk [vmem:[#allocation4 + $0x58] sm:$0xff] %vm46_vm0, %v4537_v41 }
  0x14   :  { %v53_v14 = vadd.f32 %v52_v12, %v51_v10  ;;  %v60_v15 = vadd.f32 %v59_v13, %v58_v11  ;;  %v218_v49 = vsel %vm46_vm0, %v3132_v47, 0.0  ;;  %167 = vst.msk [vmem:[#allocation4 + $0x60] sm:$0xff] %vm46_vm0, %v4537_v41  ;;  %v3164_v8 = vld [vmem:[#allocation4 + $0x20] sm:$0xff] }
  0x15   :  { %219 = vadd.xlane.f32.xlu2 %v218_v49  ;;  %168 = vst.msk [vmem:[#allocation4 + $0x68] sm:$0xff] %vm46_vm0, %v4537_v41  ;;  %v3144_v51 = vld [vmem:[#allocation4 + $0x30] sm:$0xff]  ;;  %v3170_v10 = vmul.f32 %v3164_v8, %v3164_v8 }
  0x16   :  { %v61_v16 = vadd.f32 %v60_v15, %v53_v14  ;;  %169 = vst.msk [vmem:[#allocation4 + $0x70] sm:$0xff] %vm46_vm0, %v4537_v41  ;;  %v3150_v54 = vmul.f32 %v3144_v51, %v3144_v51  ;;  %v3156_v5 = vld [vmem:[#allocation4 + $0x38] sm:$0xff] }
  0x17   :  { %170 = vst.msk [vmem:[#allocation4 + $0x78] sm:$0xff] %vm46_vm0, %v4537_v41  ;;  %v3160_v6 = vmul.f32 %v3156_v5, %v3156_v5  ;;  %v215_v13 = vsel %vm46_vm0, %v3170_v10, 0.0 }
  0x18   :  { %v62_v17 = vmul.f32 0.0625, %v61_v16  ;;  %v221_v58 = vsel %vm46_vm0, %v3150_v54, 0.0  ;;  %v3166_v9 = vld [vmem:[#allocation4 + $0x48] sm:$0xff] }
  0x19   :  { %v224_v7 = vsel %vm46_vm0, %v3160_v6, 0.0  ;;  %v3174_v11 = vmul.f32 %v3166_v9, %v3166_v9 }
  0x1a   :  { %v3098_v18 = vsub.f32 %v44_v0, %v62_v17  ;;  %v3100_v19 = vsub.f32 %v45_v1, %v62_v17  ;;  %v3176_v12 = vld [vmem:[#allocation4 + $0x58] sm:$0xff] }
  0x1b   :  { %v230_v14 = vsel %vm46_vm0, %v3174_v11, 0.0  ;;  %v3184_v15 = vmul.f32 %v3176_v12, %v3176_v12  ;;  %v183_v17 = vld [vmem:[#allocation4 + $0x60] sm:$0xff] }
  0x1c   :  { %v65_v20 = vmul.f32 %v3098_v18, %v3098_v18  ;;  %v88_v21 = vsel %vm46_vm0, %v3098_v18, 0.0  ;;  %v95_v22 = vsel %vm46_vm0, %v3100_v19, 0.0  ;;  %v76_v28 = vmul.f32 %v3100_v19, %v3100_v19 }
  0x1d   :  { %v89_v23 = vrot.slane %v88_v21, 4  ;;  %v96_v24 = vrot.slane %v95_v22, 4  ;;  %222 = vadd.xlane.f32.xlu2 %v221_v58  ;;  %v236_v16 = vsel %vm46_vm0, %v3184_v15, 0.0 }
  0x1e   :  { %v66_v25 = vsel %vm46_vm0, %v65_v20, 0.0  ;;  %v77_v33 = vsel %vm46_vm0, %v76_v28, 0.0  ;;  %v3188_v20 = vmul.f32 %v183_v17, %v183_v17 }
  0x1f   :  { %67 = vadd.xlane.f32.xlu0 %v66_v25  ;;  %v90_v26 = vadd.f32 %v89_v23, %v88_v21  ;;  %v97_v27 = vadd.f32 %v96_v24, %v95_v22 }
  0x20   :  { %v239_v22 = vsel %vm46_vm0, %v3188_v20, 0.0 }
  0x21   :  { %v91_v29 = vrot.slane %v90_v26, 2  ;;  %v98_v30 = vrot.slane %v97_v27, 2 }
  0x23   :  { %v92_v31 = vadd.f32 %v91_v29, %v90_v26  ;;  %v99_v32 = vadd.f32 %v98_v30, %v97_v27 }
  0x25   :  { %v93_v34 = vrot.slane %v92_v31, 1  ;;  %v100_v35 = vrot.slane %v99_v32, 1  ;;  %231 = vadd.xlane.f32.xlu2 %v230_v14 }
  0x27   :  { %78 = vadd.xlane.f32.xlu0 %v77_v33  ;;  %v94_v36 = vadd.f32 %v93_v34, %v92_v31  ;;  %v101_v37 = vadd.f32 %v100_v35, %v99_v32  ;;  %v185_v33 = vld [vmem:[#allocation4 + $0x70] sm:$0xff] }
  0x28   :  { %v3192_v34 = vmul.f32 %v185_v33, %v185_v33 }
  0x29   :  { %v102_v38 = vadd.f32 %v101_v37, %v94_v36  ;;  %v181_v37 = vld [vmem:[#allocation4 + $0x50] sm:$0xff] }
  0x2a   :  { %v245_v35 = vsel %vm46_vm0, %v3192_v34, 0.0 }
  0x2b   :  { %v104_v39 = vmul.f32 %v102_v38, %v102_v38 }
  0x2d   :  { %v106_v40 = vsel %vm105_vm1, %v104_v39, 0.0  ;;  %237 = vadd.xlane.f32.xlu2 %v236_v16  ;;  %v3196_v39 = vmul.f32 %v181_v37, %v181_v37  ;;  %v402_v16 = vsel %vm46_vm0, %v181_v37, 0 }
  0x2e   :  { %107 = vadd.xlane.f32.xlu1 %v106_v40 }
  0x2f   :  { %225 = vadd.xlane.f32.xlu0 %v224_v7  ;;  %v233_v40 = vsel %vm46_vm0, %v3196_v39, 0.0 }
  0x35   :  { %240 = vadd.xlane.f32.xlu2 %v239_v22 }
  0x36   :  { %216 = vadd.xlane.f32.xlu1 %v215_v13 }
  0x37   :  { %234 = vadd.xlane.f32.xlu0 %v233_v40 }
  0x3d   :  { %246 = vadd.xlane.f32.xlu2 %v245_v35 }
  0x88   :  { %v220_v36 = vpop.xlane.xlu2 %219 }
  0x89   :  { %v256_v38 = vmul.f32 -0.5, %v220_v36 }
  0x8b   :  { %273 = vst.msk [vmem:[#allocation5 + $0x28] sm:$0xff] %vm267_vm6, %v256_v38 }
  0x92   :  { %v68_v42 = vpop.xlane.xlu0 %67  ;;  %v1231_v13 = vld [vmem:[#allocation5 + $0x28] sm:$0xff] }
  0x93   :  { %v69_v43 = vrot.slane %v68_v42, 4 }
  0x95   :  { %v70_v44 = vadd.f32 %v69_v43, %v68_v42  ;;  %v223_v42 = vpop.xlane.xlu2 %222 }
  0x96   :  { %v257_v43 = vmul.f32 -0.5, %v223_v42 }
  0x97   :  { %v71_v46 = vrot.slane %v70_v44, 2 }
  0x98   :  { %274 = vst.msk [vmem:[#allocation5 + $0x30] sm:$0xff] %vm267_vm6, %v257_v43 }
  0x99   :  { %v72_v48 = vadd.f32 %v71_v46, %v70_v44  ;;  %v3202_v44 = vld [vmem:[#allocation4 + $0x78] sm:$0xff]  ;;  %v414_v46 = vsel %vm46_vm0, %v185_v33, 0 }
  0x9a   :  { %v79_v50 = vpop.xlane.xlu0 %78 }
  0x9b   :  { %v80_v52 = vrot.slane %v79_v50, 4  ;;  %v73_v53 = vrot.slane %v72_v48, 1 }
  0x9d   :  { %v81_v55 = vadd.f32 %v80_v52, %v79_v50  ;;  %v74_v56 = vadd.f32 %v73_v53, %v72_v48  ;;  %v319_v48 = vld [vmem:[#allocation4 + $0x68] sm:$0xff]  ;;  %v4536_v50 = vmov 0   ;;  %v417_v52 = vsel %vm46_vm0, %v3202_v44, 0 }
  0x9e   :  { %2952 = vset.pattern.permute.xlu2 %v4536_v50  ;;  %v3208_v53 = vand.u32 4294901760, %v414_v46  ;;  %2951 = vset.pattern.permute.xlu0 %v4536_v50  ;;  %v3213_v58 = vand.u32 4294901760, %v417_v52  ;;  %v3273_v33 = vmul.f32 %v319_v48, %v319_v48 }
  0x9f   :  { %v82_v57 = vrot.slane %v81_v55, 2  ;;  %2930 = vpush %v74_v56  ;;  %v408_v56 = vsel %vm46_vm0, %v183_v17, 0  ;;  %2950 = vset.pattern.permute.xlu1 %v4536_v50  ;;  %1678 = vperm.xlu0 %2951, %v1231_v13  }
  0xa0   :  { %420 = vmatpush.xpose.msra.mxu0 %v3213_v58  ;;  %871 = vmatpush.xpose.msra.mxu3 %v3213_v58  ;;  %v242_v37 = vsel %vm46_vm0, %v3273_v33, 0.0 }
  0xa1   :  { %v108_v59 = vpop.xlane.xlu1 %107  ;;  %v83_v60 = vadd.f32 %v82_v57, %v81_v55  ;;  %v411_v55 = vsel %vm46_vm0, %v319_v48, 0 }
  0xa2   :  { %v109_v61 = vrot.slane %v108_v59, 4  ;;  %v226_v49 = vpop.xlane.xlu0 %225 }
  0xa3   :  { %v84_v62 = vrot.slane %v83_v60, 1  ;;  %v258_v57 = vmul.f32 -0.5, %v226_v49 }
  0xa4   :  { %v110_v63 = vadd.f32 %v109_v61, %v108_v59  ;;  %v3215_v59 = vand.u32 4294901760, %v411_v55  ;;  %v3219_v61 = vsub.f32 %v414_v46, %v3208_v53  ;;  %422 = vmatpush.xpose.msra.mxu0 %v3208_v53  ;;  %873 = vmatpush.xpose.msra.mxu3 %v3208_v53 }
  0xa5   :  { %v85_v0 = vadd.f32 %v84_v62, %v83_v60  ;;  %v179_v60 = vld [vmem:[#allocation4 + $0x40] sm:$0xff]  ;;  %275 = vst.msk [vmem:[#allocation5 + $0x38] sm:$0xff] %vm267_vm6, %v258_v57  ;;  %v1232_v62 = vld [vmem:[#allocation5 + $0x30] sm:$0xff] }
  0xa6   :  { %v111_v1 = vrot.slane %v110_v63, 2  ;;  %1683 = vperm.xlu2 %2952, %v1232_v62   ;;  %v396_v42 = vsel %vm46_vm0, %v179_v60, 0 }
  0xa7   :  { %2932 = vpush %v85_v0  ;;  %v3228_v0 = vsub.f32 %v411_v55, %v3215_v59  ;;  %v3295_v49 = vand.u32 4294901760, %v396_v42 }
  0xa8   :  { %v112_v2 = vadd.f32 %v111_v1, %v110_v63  ;;  %v3225_v63 = vsub.f32 %v417_v52, %v3213_v58  ;;  %v3230_v1 = vand.u32 4294901760, %v408_v56  ;;  %424 = vmatpush.xpose.msra.mxu0 %v3215_v59  ;;  %875 = vmatpush.xpose.msra.mxu3 %v3215_v59 }
  0xa9   :  { %4579 = vst [vmem:[#allocation19_spill] sm:$0xff] %v3295_v49  ;;  %v3307_v13 = vsub.f32 %v396_v42, %v3295_v49  ;;  %v390_v42 = vsel %vm46_vm0, %v3144_v51, 0 }
  0xaa   :  { %v113_v3 = vrot.slane %v112_v2, 1  ;;  %743 = vmatpush.xpose.msra.mxu2 %v3225_v63  ;;  %v4547_v7 = vand.u32 4294901760, %v3225_v63  ;;  %v3253_v22 = vsub.f32 %v408_v56, %v3230_v1 }
  0xab   :  { %4580 = vst [vmem:[#allocation20_spill] sm:$0xff] %v3307_v13 }
  0xac   :  { %v114_v4 = vadd.f32 %v113_v3, %v112_v2  ;;  %v405_v2 = vsel %vm46_vm0, %v3176_v12, 0  ;;  %v4546_v3 = vand.u32 4294901760, %v3219_v61  ;;  %v583_v12 = vsub.f32 %v3225_v63, %v4547_v7  ;;  %426 = vmatpush.xpose.msra.mxu0 %v3230_v1  ;;  %877 = vmatpush.xpose.msra.mxu3 %v3230_v1 }
  0xad   :  { %v3239_v14 = vand.u32 4294901760, %v405_v2 }
  0xae   :  { %2934 = vpush %v114_v4  ;;  %v3235_v4 = vmul.f32 %v179_v60, %v179_v60  ;;  %746 = vmatpush.xpose.msra.mxu2 %v3219_v61  ;;  %v393_v60 = vsel %vm46_vm0, %v3156_v5, 0 }
  0xb0   :  { %v227_v17 = vsel %vm46_vm0, %v3235_v4, 0.0  ;;  %428 = vmatpush.xpose.msra.mxu0 %v3239_v14  ;;  %879 = vmatpush.xpose.msra.mxu3 %v3239_v14 }
  0xb1   :  { %228 = vadd.xlane.f32.xlu1 %v227_v17 }
  0xb2   :  { %749 = vmatpush.xpose.msra.mxu2 %v3228_v0 }
  0xb6   :  { %752 = vmatpush.xpose.msra.mxu2 %v3253_v22 }
  0xb9   :  { %243 = vadd.xlane.f32.xlu1 %v242_v37 }
  0xd0   :  { %s2931_s0 = spop %2930 }
  0xd8   :  { %s2933_s1 = spop %2932 }
  0xd9   :  { %s87_s19 = sadd.f32 %s2933_s1, %s2931_s0 }
  0xdb   :  { %s103_s20 = smul.f32 32.0, %s87_s19 }
  0xdf   :  { %s2935_s21 = spop %2934 }
  0xe0   :  { %s116_s22 = smul.f32 2.0, %s2935_s21 }
  0xe2   :  { %s117_s23 = ssub.f32 %s103_s20, %s116_s22 }
  0xe4   :  { %s118_s24 = smul.f32 0.004166667, %s117_s23 }
  0xe6   :  { %s119_s25 = smul.f32 0.25, %s118_s24 }
  0xe8   :  { %s120_s26 = smul.f32 16.0, %s119_s25 }
  0xea   :  { %v121_v21 = vstv %s120_s26 }
  0xeb   :  { %2953 = vrcp.f32 %v121_v21  ;;  %v133_v26 = vand.u32 2147483648, %v121_v21  ;;  %v131_v28 = vand.u32 2147483647, %v121_v21  ;;  %vm127_vm3 = vweird.f32 %v121_v21 }
  0xed   :  { %v134_v30 = vor.u32 1.1754944e-38, %v133_v26  ;;  %vm132_vm5 = vcmp.eq.f32.partialorder %v131_v28, 8.507059e+37  ;;  %v3261_v26 = vsub.f32 %v405_v2, %v3239_v14  ;;  %v1233_v28 = vld [vmem:[#allocation5 + $0x38] sm:$0xff] }
  0xee   :  { %1688 = vperm.xlu2 %2952, %v1233_v28  }
  0xef   :  { %v4543_v36 = vand.u32 4294901760, %v3261_v26  ;;  %755 = vmatpush.xpose.msra.mxu2 %v3261_v26 }
  0xf1   :  { %v2954_v23 = vpop.eup %2953  ;;  %v607_v48 = vsub.f32 %v3261_v26, %v4543_v36  ;;  %v1304_v36 = vsel %vm46_vm0, %v3192_v34, 0 }
  0xf2   :  { %v123_v24 = vmul.f32 %v2954_v23, %v121_v21  ;;  %vm128_vm2 = vweird.f32 %v2954_v23  ;;  %v589_v21 = vsub.f32 %v3219_v61, %v4546_v3 }
  0xf3   :  { %vm129_vm4 = vmor %vm127_vm3, %vm128_vm2  ;;  %v608_v2 = vand.u32 4294901760, %v607_v48 }
  0xf4   :  { %v124_v25 = vsub.f32 1.0, %v123_v24 }
  0xf6   :  { %v125_v27 = vmul.f32 %v2954_v23, %v124_v25  ;;  %v584_v25 = vand.u32 4294901760, %v583_v12  ;;  %v3313_v12 = vand.u32 4294901760, %v393_v60 }
  0xf8   :  { %v126_v29 = vadd.f32 %v2954_v23, %v125_v27  ;;  %v3263_v27 = vand.u32 4294901760, %v402_v16  ;;  %585 = vmatpush.xpose.msra.mxu1 %v584_v25  ;;  %4581 = vst [vmem:[#allocation21_spill] sm:$0xff] %v3313_v12  ;;  %v3319_v25 = vand.u32 4294901760, %v3307_v13 }
  0xfa   :  { %v130_v31 = vsel %vm129_vm4, %v2954_v23, %v126_v29  ;;  %v4545_v23 = vand.u32 4294901760, %v3228_v0  ;;  %v590_v29 = vand.u32 4294901760, %v589_v21  ;;  %v3277_v35 = vsub.f32 %v402_v16, %v3263_v27  ;;  %430 = vmatpush.xpose.msra.mxu0 %v3263_v27  ;;  %881 = vmatpush.xpose.msra.mxu3 %v3263_v27 }
  0xfb   :  { %v135_v32 = vsel %vm132_vm5, %v134_v30, %v130_v31  ;;  %v4544_v31 = vand.u32 4294901760, %v3253_v22 }
  0xfc   :  { %2936 = vpush %v135_v32  ;;  %v595_v30 = vsub.f32 %v3228_v0, %v4545_v23  ;;  %v399_v32 = vsel %vm46_vm0, %v3166_v9, 0  ;;  %591 = vmatpush.xpose.msra.mxu1 %v590_v29  ;;  %v4542_v57 = vand.u32 4294901760, %v3277_v35  ;;  %758 = vmatpush.xpose.msra.mxu2 %v3277_v35 }
  0xfd   :  { %v601_v9 = vsub.f32 %v3253_v22, %v4544_v31  ;;  %v3286_v40 = vand.u32 4294901760, %v399_v32 }
  0xfe   :  { %v596_v38 = vand.u32 4294901760, %v595_v30  ;;  %v613_v17 = vsub.f32 %v3277_v35, %v4542_v57 }
  0xff   :  { %v602_v55 = vand.u32 4294901760, %v601_v9  ;;  %v3299_v56 = vsub.f32 %v399_v32, %v3286_v40  ;;  %432 = vmatpush.xpose.msra.mxu0 %v3286_v40  ;;  %v3327_v32 = vsub.f32 %v393_v60, %v3313_v12  ;;  %883 = vmatpush.xpose.msra.mxu3 %v3286_v40 }
 0x100   :  { %597 = vmatpush.xpose.msra.mxu1 %v596_v38  ;;  %v614_v29 = vand.u32 4294901760, %v613_v17 }
 0x101   :  { %v4541_v21 = vand.u32 4294901760, %v3299_v56  ;;  %761 = vmatpush.xpose.msra.mxu2 %v3299_v56  ;;  %v4540_v48 = vand.u32 4294901760, %v3327_v32 }
 0x103   :  { %v619_v30 = vsub.f32 %v3299_v56, %v4541_v21  ;;  %434 = vmatpush.xpose.msra.mxu0 %v3295_v49  ;;  %885 = vmatpush.xpose.msra.mxu3 %v3295_v49 }
 0x104   :  { %603 = vmatpush.xpose.msra.mxu1 %v602_v55  ;;  %v387_v55 = vsel %vm46_vm0, %v3126_v45, 0 }
 0x105   :  { %764 = vmatpush.xpose.msra.mxu2 %v3307_v13 }
 0x107   :  { %436 = vmatpush.xpose.msra.mxu0 %v3313_v12  ;;  %887 = vmatpush.xpose.msra.mxu3 %v3313_v12 }
 0x108   :  { %609 = vmatpush.xpose.msra.mxu1 %v608_v2 }
 0x109   :  { %767 = vmatpush.xpose.msra.mxu2 %v3327_v32 }
 0x10c   :  { %615 = vmatpush.xpose.msra.mxu1 %v614_v29 }
 0x12d   :  { %s2937_s27 = spop %2936 }
 0x12e   :  { %s137_s28 = smul.f32 2.0, %s2937_s27 }
 0x130   :  { %v3256_v24 = vstv %s137_s28 }
 0x131   :  { %2955 = vrsqrt.f32 %v3256_v24  ;;  %vm146_vm7 = vcmp.eq.f32.partialorder %v3256_v24, inf  ;;  %v149_v37 = vand.u32 2147483648, %v3256_v24  ;;  %vm148_vm8 = vcmp.eq.f32.partialorder %v3256_v24, 0.0 }
 0x137   :  { %v2956_v43 = vpop.eup %2955 }
 0x138   :  { %v140_v46 = vmul.f32 %v2956_v43, %v3256_v24 }
 0x13a   :  { %v141_v52 = vmul.f32 %v2956_v43, %v140_v46  ;;  %v625_v46 = vsub.f32 %v3307_v13, %v3319_v25 }
 0x13c   :  { %v142_v62 = vmul.f32 0.5, %v141_v52  ;;  %v3346_v51 = vand.u32 4294901760, %v625_v46  ;;  %v631_v52 = vsub.f32 %v3327_v32, %v4540_v48 }
 0x13e   :  { %v143_v16 = vsub.f32 1.5, %v142_v62  ;;  %4583 = vst [vmem:[#allocation23_spill] sm:$0xff] %v3346_v51  ;;  %v3360_v62 = vand.u32 4294901760, %v387_v55  ;;  %v632_v2 = vand.u32 4294901760, %v631_v52  ;;  %v3393_v52 = vld [vmem:[#allocation4 + $0x10] sm:$0xff] }
 0x140   :  { %v144_v5 = vmul.f32 %v2956_v43, %v143_v16  ;;  %v620_v43 = vand.u32 4294901760, %v619_v30  ;;  %4584 = vst [vmem:[#allocation24_spill] sm:$0xff] %v3360_v62  ;;  %v3368_v16 = vsub.f32 %v387_v55, %v3360_v62 }
 0x142   :  { %v145_v28 = vmul.f32 %v144_v5, %v3256_v24  ;;  %621 = vmatpush.xpose.msra.mxu1 %v620_v43  ;;  %4585 = vst [vmem:[#allocation25_spill] sm:$0xff] %v3368_v16  ;;  %v384_v5 = vsel %vm46_vm0, %v3164_v8, 0  ;;  %v3379_v30 = vand.u32 4294901760, %v3368_v16  ;;  %v202_v43 = vmul.f32 %v3202_v44, %v3202_v44 }
 0x144   :  { %v147_v38 = vsel %vm146_vm7, %v3256_v24, %v145_v28  ;;  %v3343_v24 = vand.u32 4294901760, %v390_v42  ;;  %v3376_v28 = vand.u32 4294901760, %v384_v5  ;;  %4587 = vst [vmem:[#allocation27_spill] sm:$0xff] %v3379_v30  ;;  %v1307_v21 = vsel %vm46_vm0, %v202_v43, 0 }
 0x145   :  { %v150_v9 = vsel %vm148_vm8, %v149_v37, %v147_v38  ;;  %v309_v38 = vld [vmem:[#allocation4 + $0x18] sm:$0xff]  ;;  %v3446_v57 = vand.u32 4294901760, %v1307_v21 }
 0x146   :  { %2938 = vpush %v150_v9  ;;  %v3356_v60 = vsub.f32 %v390_v42, %v3343_v24  ;;  %438 = vmatpush.xpose.msra.mxu0 %v3343_v24  ;;  %627 = vmatpush.xpose.msra.mxu1 %v3346_v51  ;;  %v3383_v37 = vsub.f32 %v384_v5, %v3376_v28  ;;  %v381_v8 = vsel %vm46_vm0, %v309_v38, 0  ;;  %v217_v42 = vpop.xlane.xlu1 %216  ;;  %v378_v5 = vsel %vm46_vm0, %v3393_v52, 0 }
 0x147   :  { %4582 = vst [vmem:[#allocation22_spill] sm:$0xff] %v3343_v24  ;;  %889 = vmatpush.xpose.msra.mxu3 %v3343_v24  ;;  %v643_v9 = vsub.f32 %v3368_v16, %v3379_v30  ;;  %v3391_v46 = vmul.f32 %v309_v38, %v309_v38  ;;  %v3396_v55 = vand.u32 4294901760, %v381_v8  ;;  %v3405_v44 = vand.u32 4294901760, %v378_v5 }
 0x148   :  { %770 = vmatpush.xpose.msra.mxu2 %v3356_v60  ;;  %v4539_v45 = vand.u32 4294901760, %v3356_v60  ;;  %4586 = vst [vmem:[#allocation26_spill] sm:$0xff] %v3376_v28  ;;  %v3408_v38 = vand.u32 4294901760, %v3383_v37 }
 0x149   :  { %v212_v50 = vsel %vm46_vm0, %v3391_v46, 0.0  ;;  %v3421_v41 = vsub.f32 %v378_v5, %v3405_v44 }
 0x14a   :  { %440 = vmatpush.xpose.msra.mxu0 %v3360_v62  ;;  %633 = vmatpush.xpose.msra.mxu1 %v632_v2  ;;  %v637_v17 = vsub.f32 %v3356_v60, %v4539_v45  ;;  %v3398_v2 = vand.u32 4294901760, %v643_v9  ;;  %v3414_v9 = vsub.f32 %v381_v8, %v3396_v55 }
 0x14b   :  { %891 = vmatpush.xpose.msra.mxu3 %v3360_v62  ;;  %213 = vadd.xlane.f32.xlu2 %v212_v50 }
 0x14c   :  { %773 = vmatpush.xpose.msra.mxu2 %v3368_v16  ;;  %v638_v29 = vand.u32 4294901760, %v637_v17  ;;  %4588 = vst [vmem:[#allocation28_spill] sm:$0xff] %v3398_v2  ;;  %v255_v17 = vmul.f32 -0.5, %v217_v42  ;;  %v649_v42 = vsub.f32 %v3383_v37, %v3408_v38  ;;  %v3424_v45 = vand.u32 4294901760, %v3414_v9 }
 0x14e   :  { %442 = vmatpush.xpose.msra.mxu0 %v3376_v28  ;;  %639 = vmatpush.xpose.msra.mxu1 %v638_v29  ;;  %v248_v29 = vsel %vm46_vm0, %v202_v43, 0.0  ;;  %272 = vst.msk [vmem:[#allocation5 + $0x20] sm:$0xff] %vm267_vm6, %v255_v17  ;;  %v3426_v48 = vand.u32 4294901760, %v649_v42  ;;  %v655_v8 = vsub.f32 %v3414_v9, %v3424_v45  ;;  %v3437_v17 = vand.u32 4294901760, %v3421_v41 }
 0x14f   :  { %893 = vmatpush.xpose.msra.mxu3 %v3376_v28  ;;  %249 = vadd.xlane.f32.xlu0 %v248_v29  ;;  %v1301_v43 = vsel %vm46_vm0, %v3273_v33, 0 }
 0x150   :  { %776 = vmatpush.xpose.msra.mxu2 %v3383_v37  ;;  %v3434_v50 = vand.u32 4294901760, %v655_v8  ;;  %v661_v5 = vsub.f32 %v3421_v41, %v3437_v17 }
 0x152   :  { %444 = vmatpush.xpose.msra.mxu0 %v3396_v55  ;;  %645 = vmatpush.xpose.msra.mxu1 %v3398_v2  ;;  %v3442_v42 = vand.u32 4294901760, %v661_v5  ;;  %v3454_v5 = vsub.f32 %v1307_v21, %v3446_v57 }
 0x153   :  { %895 = vmatpush.xpose.msra.mxu3 %v3396_v55 }
 0x154   :  { %779 = vmatpush.xpose.msra.mxu2 %v3414_v9  ;;  %4589 = vst [vmem:[#allocation29_spill] sm:$0xff] %v3454_v5  ;;  %v4553_v3 = vand.u32 4294901760, %v3454_v5 }
 0x155   :  { %v1230_v29 = vld [vmem:[#allocation5 + $0x20] sm:$0xff] }
 0x156   :  { %446 = vmatpush.xpose.msra.mxu0 %v3405_v44  ;;  %651 = vmatpush.xpose.msra.mxu1 %v3426_v48 }
 0x157   :  { %897 = vmatpush.xpose.msra.mxu3 %v3405_v44  ;;  %1673 = vperm.xlu1 %2950, %v1230_v29   ;;  %v3456_v29 = vand.u32 4294901760, %v1304_v36 }
 0x158   :  { %782 = vmatpush.xpose.msra.mxu2 %v3421_v41 }
 0x159   :  { %v3463_v34 = vsub.f32 %v1304_v36, %v3456_v29 }
 0x15a   :  { %657 = vmatpush.xpose.msra.mxu1 %v3434_v50 }
 0x15b   :  { %4590 = vst [vmem:[#allocation30_spill] sm:$0xff] %v3463_v34  ;;  %v4593_v2 = vand.u32 4294901760, %v3463_v34 }
 0x15e   :  { %663 = vmatpush.xpose.msra.mxu1 %v3442_v42 }
 0x177   :  { %s2939_s29 = spop %2938 }
 0x178   :  { %v152_v8 = vstv %s2939_s29 }
 0x179   :  { %v153_v31 = vmul.f32 %v152_v8, %v3098_v18  ;;  %v155_v23 = vmul.f32 %v152_v8, %v3100_v19  ;;  %v3465_v18 = vand.u32 4294901760, %v1301_v43 }
 0x17b   :  { %154 = vst.msk [vmem:[#allocation4] sm:$0xff] %vm46_vm0, %v153_v31  ;;  %v1298_v31 = vsel %vm46_vm0, %v3188_v20, 0  ;;  %v3482_v62 = vsub.f32 %v1301_v43, %v3465_v18 }
 0x17c   :  { %156 = vst.msk [vmem:[#allocation4 + $0x8] sm:$0xff] %vm46_vm0, %v155_v23  ;;  %v1353_v23 = vsub.f32 %v3454_v5, %v4553_v3  ;;  %v3488_v24 = vand.u32 4294901760, %v1298_v31  ;;  %v1295_v3 = vsel %vm46_vm0, %v3184_v15, 0  ;;  %v1359_v15 = vsub.f32 %v3463_v34, %v4593_v2 }
 0x17d   :  { %v3504_v12 = vand.u32 4294901760, %v1295_v3  ;;  %v4595_v30 = vand.u32 4294901760, %v3482_v62 }
 0x17e   :  { %v1354_v5 = vand.u32 4294901760, %v1353_v23  ;;  %v1292_v23 = vsel %vm46_vm0, %v3196_v39, 0  ;;  %v1360_v34 = vand.u32 4294901760, %v1359_v15 }
 0x17f   :  { %v1365_v49 = vsub.f32 %v3482_v62, %v4595_v30 }
 0x181   :  { %v1366_v30 = vand.u32 4294901760, %v1365_v49 }
 0x182   :  { %v171_v19 = vld [vmem:[#allocation4] sm:$0xff] }
 0x183   :  { %v307_v21 = vld [vmem:[#allocation4 + $0x8] sm:$0xff]  ;;  %v3469_v8 = vmul.f32 %v171_v19, %v171_v19  ;;  %v372_v7 = vsel %vm46_vm0, %v171_v19, 0 }
 0x184   :  { %v375_v36 = vsel %vm46_vm0, %v307_v21, 0  ;;  %v3477_v13 = vmul.f32 %v307_v21, %v307_v21  ;;  %v3479_v51 = vand.u32 4294901760, %v372_v7 }
 0x185   :  { %4591 = vst [vmem:[#allocation31_spill] sm:$0xff] %v3469_v8  ;;  %v3484_v20 = vand.u32 4294901760, %v375_v36  ;;  %v203_v19 = vsel %vm46_vm0, %v3469_v8, 0.0  ;;  %v3522_v8 = vand.u32 4294901760, %v1292_v23 }
 0x186   :  { %4592 = vst [vmem:[#allocation32_spill] sm:$0xff] %v3477_v13  ;;  %v206_v33 = vsel %vm46_vm0, %v3477_v13, 0.0  ;;  %204 = vadd.xlane.f32.xlu2 %v203_v19  ;;  %v671_v21 = vsub.f32 %v372_v7, %v3479_v51  ;;  %v3509_v19 = vsub.f32 %v1298_v31, %v3488_v24  ;;  %v3520_v31 = vsub.f32 %v1295_v3, %v3504_v12 }
 0x187   :  { %448 = vmatpush.xpose.msra.mxu0 %v3484_v20  ;;  %899 = vmatpush.xpose.msra.mxu3 %v3484_v20  ;;  %v665_v43 = vsub.f32 %v375_v36, %v3484_v20  ;;  %v4594_v36 = vand.u32 4294901760, %v3225_v63  ;;  %v1289_v63 = vsel %vm46_vm0, %v3174_v11, 0  ;;  %v4596_v3 = vand.u32 4294901760, %v3219_v61 }
 0x188   :  { %207 = vadd.xlane.f32.xlu0 %v206_v33  ;;  %v3498_v16 = vand.u32 4294901760, %v671_v21  ;;  %v1370_v13 = vand.u32 4294901760, %v3509_v19  ;;  %v3536_v15 = vsub.f32 %v1292_v23, %v3522_v8  ;;  %v1286_v11 = vsel %vm46_vm0, %v3235_v4, 0 }
 0x189   :  { %785 = vmatpush.xpose.msra.mxu2 %v665_v43  ;;  %v3506_v7 = vand.u32 4294901760, %v665_v43  ;;  %v3548_v61 = vmul.f32 %v3393_v52, %v3393_v52 }
 0x18a   :  { %v454_v33 = vsub.f32 %v671_v21, %v3498_v16 }
 0x18b   :  { %450 = vmatpush.xpose.msra.mxu0 %v3479_v51  ;;  %901 = vmatpush.xpose.msra.mxu3 %v3479_v51  ;;  %v667_v2 = vsub.f32 %v665_v43, %v3506_v7  ;;  %v209_v23 = vsel %vm46_vm0, %v3548_v61, 0.0 }
 0x18c   :  { %v455_v28 = vand.u32 4294901760, %v454_v33  ;;  %v1371_v33 = vsub.f32 %v3509_v19, %v1370_v13  ;;  %210 = vadd.xlane.f32.xlu1 %v209_v23 }
 0x18d   :  { %788 = vmatpush.xpose.msra.mxu2 %v671_v21  ;;  %v668_v39 = vand.u32 4294901760, %v667_v2  ;;  %v3541_v2 = vand.u32 4294901760, %v1289_v63 }
 0x18e   :  { %905 = vmatmul.f32.vlgmr.msra.gmra.mxu3 %v3498_v16  ;;  %456 = vmatmul.f32.vlgmr.msra.gmra.mxu0 %v455_v28  ;;  %v1372_v4 = vand.u32 4294901760, %v1371_v33 }
 0x18f   :  { %1002 = vmatpush.xpose.msrb.mxu0 %v4594_v36  ;;  %1355 = vmatpush.xpose.msrb.mxu3 %v1354_v5  ;;  %v1376_v5 = vand.u32 4294901760, %v3520_v31  ;;  %v3560_v52 = vsub.f32 %v1289_v63, %v3541_v2 }
 0x190   :  { %669 = vmatpush.xpose.msra.mxu1 %v668_v39  ;;  %791 = vmatmul.f32.vlgmr.msra.gmra.mxu2 %v671_v21  ;;  %v4597_v21 = vand.u32 4294901760, %v3228_v0  ;;  %v4598_v0 = vand.u32 4294901760, %v3253_v22  ;;  %v4599_v22 = vand.u32 4294901760, %v3261_v26 }
 0x191   :  { %1310 = vmatpush.xpose.msrb.mxu2 %v3446_v57  ;;  %v1377_v49 = vsub.f32 %v3520_v31, %v1376_v5 }
 0x193   :  { %1006 = vmatpush.xpose.msrb.mxu0 %v4596_v3  ;;  %1361 = vmatpush.xpose.msrb.mxu3 %v1360_v34  ;;  %v1382_v34 = vand.u32 4294901760, %v3536_v15  ;;  %v1378_v36 = vand.u32 4294901760, %v1377_v49  ;;  %v1388_v3 = vand.u32 4294901760, %v3560_v52 }
 0x194   :  { %675 = vmatpush.xpose.msra.mxu1 %v455_v28  ;;  %v3562_v28 = vand.u32 4294901760, %v1286_v11 }
 0x195   :  { %1312 = vmatpush.xpose.msrb.mxu2 %v3456_v29  ;;  %v1383_v63 = vsub.f32 %v3536_v15, %v1382_v34  ;;  %v1389_v33 = vsub.f32 %v3560_v52, %v1388_v3 }
 0x196   :  { %911 = vmatmul.f32.gmra.mxu3 %v3506_v7  ;;  %464 = vmatmul.f32.gmra.mxu0 %v668_v39 }
 0x197   :  { %1010 = vmatpush.xpose.msrb.mxu0 %v4597_v21  ;;  %1367 = vmatpush.xpose.msrb.mxu3 %v1366_v30  ;;  %v3577_v30 = vsub.f32 %v1286_v11, %v3562_v28  ;;  %v1390_v49 = vand.u32 4294901760, %v1389_v33 }
 0x198   :  { %1129 = vmatpush.xpose.msrb.mxu1 %v3213_v58  ;;  %v1283_v58 = vsel %vm46_vm0, %v3160_v6, 0  ;;  %796 = vmatmul.f32.gmra.mxu2 %v665_v43  ;;  %v1280_v43 = vsel %vm46_vm0, %v3150_v54, 0  ;;  %v1277_v54 = vsel %vm46_vm0, %v3132_v47, 0 }
 0x199   :  { %677 = vmatmul.f32.vlgmr.msra.gmra.mxu1 %v3479_v51  ;;  %1314 = vmatpush.xpose.msrb.mxu2 %v3465_v18  ;;  %v3579_v6 = vand.u32 4294901760, %v1283_v58  ;;  %v3586_v39 = vand.u32 4294901760, %v1280_v43  ;;  %v4577_v11 = vand.u32 4294901760, %v3577_v30 }
 0x19b   :  { %1014 = vmatpush.xpose.msrb.mxu0 %v4598_v0  ;;  %1373 = vmatpush.xpose.msrb.mxu3 %v1372_v4  ;;  %v3594_v21 = vsub.f32 %v1283_v58, %v3579_v6  ;;  %v3606_v26 = vsub.f32 %v1280_v43, %v3586_v39  ;;  %v1395_v47 = vsub.f32 %v3577_v30, %v4577_v11  ;;  %v3613_v4 = vand.u32 4294901760, %v1277_v54  ;;  %v295_v43 = vld [vmem:[#allocation4 + $0x30] sm:$0xff] }
 0x19c   :  { %1131 = vmatpush.xpose.msrb.mxu1 %v3208_v53  ;;  %v1384_v53 = vand.u32 4294901760, %v1383_v63  ;;  %v4601_v58 = vand.u32 4294901760, %v3299_v56  ;;  %v1271_v56 = vsel %vm46_vm0, %v3391_v46, 0 }
 0x19d   :  { %1316 = vmatpush.xpose.msrb.mxu2 %v3488_v24  ;;  %v4573_v23 = vand.u32 4294901760, %v3594_v21  ;;  %v1396_v0 = vand.u32 4294901760, %v1395_v47 }
 0x19e   :  { %917 = vmatmul.f32.gmra.mxu3 %v3437_v17  ;;  %472 = vmatmul.f32.gmra.mxu0 %v3442_v42  ;;  %v232_v42 = vpop.xlane.xlu2 %231 }
 0x19f   :  { %1018 = vmatpush.xpose.msrb.mxu0 %v4599_v22  ;;  %1379 = vmatpush.xpose.msrb.mxu3 %v1378_v36  ;;  %v1401_v36 = vsub.f32 %v3594_v21, %v4573_v23  ;;  %v342_v22 = vsel %vm46_vm0, %v295_v43, 0 }
 0x1a0   :  { %1133 = vmatpush.xpose.msrb.mxu1 %v3215_v59  ;;  %v4600_v59 = vand.u32 4294901760, %v3277_v35  ;;  %801 = vmatmul.f32.gmra.mxu2 %v3421_v41  ;;  %v1274_v35 = vsel %vm46_vm0, %v3170_v10, 0  ;;  %v260_v41 = vmul.f32 -0.5, %v232_v42  ;;  %v3627_v10 = vsub.f32 %v1277_v54, %v3613_v4 }
 0x1a1   :  { %681 = vmatmul.f32.gmra.mxu1 %v3484_v20  ;;  %1318 = vmatpush.xpose.msrb.mxu2 %v3504_v12  ;;  %v3629_v63 = vand.u32 4294901760, %v1274_v35 }
 0x1a2   :  { %277 = vst.msk [vmem:[#allocation5 + $0x48] sm:$0xff] %vm267_vm6, %v260_v41  ;;  %v4570_v46 = vand.u32 4294901760, %v3627_v10 }
 0x1a3   :  { %1022 = vmatpush.xpose.msrb.mxu0 %v4600_v59  ;;  %1385 = vmatpush.xpose.msrb.mxu3 %v1384_v53  ;;  %v1402_v53 = vand.u32 4294901760, %v1401_v36  ;;  %v3646_v33 = vsub.f32 %v1274_v35, %v3629_v63  ;;  %v3653_v59 = vand.u32 4294901760, %v342_v22 }
 0x1a4   :  { %1135 = vmatpush.xpose.msrb.mxu1 %v3230_v1  ;;  %v4572_v1 = vand.u32 4294901760, %v3606_v26  ;;  %v1413_v42 = vsub.f32 %v3627_v10, %v4570_v46  ;;  %v4609_v46 = vld [vmem:[#allocation26_spill] sm:$0xff] }
 0x1a5   :  { %1320 = vmatpush.xpose.msrb.mxu2 %v3522_v8  ;;  %v4569_v35 = vand.u32 4294901760, %v3646_v33 }
 0x1a6   :  { %923 = vmatmul.f32.gmra.mxu3 %v3424_v45  ;;  %480 = vmatmul.f32.gmra.mxu0 %v3434_v50  ;;  %v3648_v50 = vand.u32 4294901760, %v1271_v56  ;;  %v238_v54 = vpop.xlane.xlu2 %237 }
 0x1a7   :  { %1026 = vmatpush.xpose.msrb.mxu0 %v4601_v58  ;;  %1391 = vmatpush.xpose.msrb.mxu3 %v1390_v49  ;;  %v262_v49 = vmul.f32 -0.5, %v238_v54  ;;  %v296_v58 = vld [vmem:[#allocation4 + $0x38] sm:$0xff] }
 0x1a8   :  { %1137 = vmatpush.xpose.msrb.mxu1 %v3239_v14  ;;  %806 = vmatmul.f32.gmra.mxu2 %v3414_v9  ;;  %v1407_v14 = vsub.f32 %v3606_v26, %v4572_v1  ;;  %v1268_v9 = vsel %vm46_vm0, %v3548_v61, 0  ;;  %v3663_v61 = vsub.f32 %v1271_v56, %v3648_v50  ;;  %v345_v43 = vsel %vm46_vm0, %v296_v58, 0  ;;  %v4605_v56 = vld [vmem:[#allocation19_spill] sm:$0xff]  ;;  %v4612_v1 = vld [vmem:[#allocation22_spill] sm:$0xff] }
 0x1a9   :  { %685 = vmatmul.f32.gmra.mxu1 %v3405_v44  ;;  %1322 = vmatpush.xpose.msrb.mxu2 %v3541_v2  ;;  %v3665_v41 = vand.u32 4294901760, %v1268_v9  ;;  %279 = vst.msk [vmem:[#allocation5 + $0x58] sm:$0xff] %vm267_vm6, %v262_v49  ;;  %v3690_v54 = vand.u32 4294901760, %v345_v43 }
 0x1aa   :  { %v1408_v47 = vand.u32 4294901760, %v1407_v14  ;;  %v1414_v14 = vand.u32 4294901760, %v1413_v42 }
 0x1ab   :  { %1030 = vmatpush.xpose.msrb.mxu0 %v3319_v25  ;;  %1397 = vmatpush.xpose.msrb.mxu3 %v1396_v0  ;;  %v4604_v0 = vld [vmem:[#allocation32_spill] sm:$0xff] }
 0x1ac   :  { %1139 = vmatpush.xpose.msrb.mxu1 %v3263_v27  ;;  %v4602_v27 = vand.u32 4294901760, %v3327_v32  ;;  %v4603_v32 = vand.u32 4294901760, %v3356_v60  ;;  %v1265_v36 = vsel %vm46_vm0, %v4604_v0, 0  ;;  %v3685_v60 = vsub.f32 %v1268_v9, %v3665_v41 }
 0x1ad   :  { %1324 = vmatpush.xpose.msrb.mxu2 %v3562_v28 }
 0x1ae   :  { %929 = vmatmul.f32.gmra.mxu3 %v3408_v38  ;;  %488 = vmatmul.f32.gmra.mxu0 %v3426_v48  ;;  %v1419_v48 = vsub.f32 %v3646_v33, %v4569_v35  ;;  %v241_v49 = vpop.xlane.xlu2 %240  ;;  %v4576_v35 = vand.u32 4294901760, %v3685_v60 }
 0x1af   :  { %1034 = vmatpush.xpose.msrb.mxu0 %v4602_v27  ;;  %1403 = vmatpush.xpose.msrb.mxu3 %v1402_v53  ;;  %v3688_v53 = vand.u32 4294901760, %v1265_v36  ;;  %v4606_v27 = vld [vmem:[#allocation27_spill] sm:$0xff]  ;;  %v263_v58 = vmul.f32 -0.5, %v241_v49 }
 0x1b0   :  { %1141 = vmatpush.xpose.msrb.mxu1 %v3286_v40  ;;  %v500_v40 = vsub.f32 %v342_v22, %v3653_v59  ;;  %811 = vmatmul.f32.gmra.mxu2 %v3383_v37  ;;  %v4571_v22 = vand.u32 4294901760, %v3663_v61  ;;  %v1420_v0 = vand.u32 4294901760, %v1419_v48  ;;  %v508_v48 = vsub.f32 %v345_v43, %v3690_v54 }
 0x1b1   :  { %689 = vmatmul.f32.gmra.mxu1 %v3396_v55  ;;  %1326 = vmatpush.xpose.msrb.mxu2 %v3579_v6  ;;  %280 = vst.msk [vmem:[#allocation5 + $0x60] sm:$0xff] %vm267_vm6, %v263_v58  ;;  %v1431_v58 = vsub.f32 %v3685_v60, %v4576_v35 }
 0x1b2   :  { %v501_v37 = vand.u32 4294901760, %v500_v40  ;;  %v1425_v9 = vsub.f32 %v3663_v61, %v4571_v22  ;;  %v4611_v22 = vld [vmem:[#allocation25_spill] sm:$0xff]  ;;  %v509_v43 = vand.u32 4294901760, %v508_v48 }
 0x1b3   :  { %1038 = vmatpush.xpose.msrb.mxu0 %v4603_v32  ;;  %1409 = vmatpush.xpose.msrb.mxu3 %v1408_v47  ;;  %v4607_v47 = vld [vmem:[#allocation31_spill] sm:$0xff]  ;;  %v4608_v32 = vld [vmem:[#allocation21_spill] sm:$0xff] }
 0x1b4   :  { %1143 = vmatpush.xpose.msrb.mxu1 %v4605_v56  ;;  %v1262_v42 = vsel %vm46_vm0, %v4607_v47, 0  ;;  %v4610_v47 = vld [vmem:[#allocation28_spill] sm:$0xff]  ;;  %v502_v49 = vsub.f32 %v500_v40, %v501_v37 }
 0x1b5   :  { %1328 = vmatpush.xpose.msrb.mxu2 %v3586_v39 }
 0x1b6   :  { %935 = vmatmul.f32.gmra.mxu3 %v4606_v27  ;;  %496 = vmatmul.f32.gmra.mxu0 %v4610_v47 }
 0x1b7   :  { %1042 = vmatpush.xpose.msrb.mxu0 %v4606_v27  ;;  %1415 = vmatpush.xpose.msrb.mxu3 %v1414_v14  ;;  %v3706_v14 = vsub.f32 %v1265_v36, %v3688_v53  ;;  %v1426_v27 = vand.u32 4294901760, %v1425_v9  ;;  %v503_v36 = vand.u32 4294901760, %v502_v49  ;;  %v298_v9 = vld [vmem:[#allocation4 + $0x48] sm:$0xff]  ;;  %v510_v49 = vsub.f32 %v508_v48, %v509_v43 }
 0x1b8   :  { %1145 = vmatpush.xpose.msrb.mxu1 %v4608_v32  ;;  %v3709_v32 = vand.u32 4294901760, %v1262_v42  ;;  %816 = vmatmul.f32.gmra.mxu2 %v4611_v22 }
 0x1b9   :  { %693 = vmatmul.f32.gmra.mxu1 %v4609_v46  ;;  %1330 = vmatpush.xpose.msrb.mxu2 %v3613_v4  ;;  %v4574_v47 = vand.u32 4294901760, %v3706_v14 }
 0x1ba   :  { %v3720_v23 = vsub.f32 %v1262_v42, %v3709_v32 }
 0x1bb   :  { %1046 = vmatpush.xpose.msrb.mxu0 %v3408_v38  ;;  %1421 = vmatpush.xpose.msrb.mxu3 %v1420_v0  ;;  %v247_v38 = vpop.xlane.xlu2 %246  ;;  %v1432_v0 = vand.u32 4294901760, %v1431_v58  ;;  %v1437_v42 = vsub.f32 %v3706_v14, %v4574_v47  ;;  %v511_v58 = vand.u32 4294901760, %v510_v49  ;;  %v229_v47 = vpop.xlane.xlu1 %228 }
 0x1bc   :  { %1147 = vmatpush.xpose.msrb.mxu1 %v4612_v1  ;;  %v265_v22 = vmul.f32 -0.5, %v247_v38  ;;  %v4613_v1 = vld [vmem:[#allocation24_spill] sm:$0xff] }
 0x1bd   :  { %1332 = vmatpush.xpose.msrb.mxu2 %v3629_v63 }
 0x1be   :  { %941 = vmatmul.f32.gmra.mxu3 %v501_v37  ;;  %282 = vst.msk [vmem:[#allocation5 + $0x70] sm:$0xff] %vm267_vm6, %v265_v22  ;;  %504 = vmatmul.f32.gmra.mxu0 %v503_v36  ;;  %v1438_v37 = vand.u32 4294901760, %v1437_v42 }
 0x1bf   :  { %1050 = vmatpush.xpose.msrb.mxu0 %v3424_v45  ;;  %1427 = vmatpush.xpose.msrb.mxu3 %v1426_v27  ;;  %v4575_v45 = vand.u32 4294901760, %v3720_v23  ;;  %v351_v27 = vsel %vm46_vm0, %v298_v9, 0 }
 0x1c0   :  { %1149 = vmatpush.xpose.msrb.mxu1 %v4613_v1  ;;  %821 = vmatmul.f32.gmra.mxu2 %v500_v40  ;;  %v3738_v38 = vand.u32 4294901760, %v351_v27  ;;  %v235_v40 = vpop.xlane.xlu0 %234 }
 0x1c1   :  { %697 = vmatmul.f32.gmra.mxu1 %v4613_v1  ;;  %1334 = vmatpush.xpose.msrb.mxu2 %v3648_v50  ;;  %v1443_v36 = vsub.f32 %v3720_v23, %v4575_v45  ;;  %v261_v9 = vmul.f32 -0.5, %v235_v40  ;;  %v4621_v40 = vld [vmem:[#allocation23_spill] sm:$0xff] }
 0x1c2   :  { %v524_v49 = vsub.f32 %v351_v27, %v3738_v38 }
 0x1c3   :  { %1054 = vmatpush.xpose.msrb.mxu0 %v3437_v17  ;;  %1433 = vmatpush.xpose.msrb.mxu3 %v1432_v0  ;;  %v3740_v22 = vpop.permute.xlu2 %1683  ;;  %v259_v17 = vmul.f32 -0.5, %v229_v47  ;;  %v299_v0 = vld [vmem:[#allocation4 + $0x50] sm:$0xff]  ;;  %v1444_v42 = vand.u32 4294901760, %v1443_v36  ;;  %278 = vst.msk [vmem:[#allocation5 + $0x50] sm:$0xff] %vm267_vm6, %v261_v9  ;;  %v4615_v47 = vld [vmem:[#allocation29_spill] sm:$0xff]  ;;  %v4619_v36 = vld [vmem:[#allocation30_spill] sm:$0xff] }
 0x1c4   :  { %1151 = vmatpush.xpose.msrb.mxu1 %v4609_v46  ;;  %4614 = vst [vmem:[#allocation32_spill] sm:$0xff] %v3740_v22 }
 0x1c5   :  { %1336 = vmatpush.xpose.msrb.mxu2 %v3665_v41  ;;  %276 = vst.msk [vmem:[#allocation5 + $0x40] sm:$0xff] %vm267_vm6, %v259_v17  ;;  %v4620_v17 = vand.u32 4294901760, %v4619_v36 }
 0x1c6   :  { %947 = vmatmul.f32.gmra.mxu3 %v509_v43  ;;  %512 = vmatmul.f32.gmra.mxu0 %v511_v58  ;;  %v4616_v43 = vand.u32 4294901760, %v4615_v47 }
 0x1c7   :  { %1058 = vmatpush.xpose.msrb.mxu0 %v3506_v7  ;;  %1439 = vmatpush.xpose.msrb.mxu3 %v1438_v37  ;;  %v354_v7 = vsel %vm46_vm0, %v299_v0, 0  ;;  %v525_v37 = vand.u32 4294901760, %v524_v49 }
 0x1c8   :  { %1153 = vmatpush.xpose.msrb.mxu1 %v3396_v55  ;;  %826 = vmatmul.f32.gmra.mxu2 %v508_v48  ;;  %v3756_v58 = vand.u32 4294901760, %v354_v7  ;;  %v300_v48 = vld [vmem:[#allocation4 + $0x58] sm:$0xff] }
 0x1c9   :  { %701 = vmatmul.f32.gmra.mxu1 %v3653_v59  ;;  %1338 = vmatpush.xpose.msrb.mxu2 %v3688_v53  ;;  %v526_v0 = vsub.f32 %v524_v49, %v525_v37 }
 0x1ca   :  { %v532_v9 = vsub.f32 %v354_v7, %v3756_v58 }
 0x1cb   :  { %1062 = vmatpush.xpose.msrb.mxu0 %v3498_v16  ;;  %1445 = vmatpush.xpose.msrb.mxu3 %v1444_v42  ;;  %v3758_v27 = vpop.permute.xlu2 %1688  ;;  %v3761_v16 = vpop.permute.xlu0 %1678  ;;  %v357_v42 = vsel %vm46_vm0, %v300_v48, 0 }
 0x1cc   :  { %1155 = vmatpush.xpose.msrb.mxu1 %v3405_v44  ;;  %4617 = vst [vmem:[#allocation19_spill] sm:$0xff] %v3758_v27  ;;  %v533_v7 = vand.u32 4294901760, %v532_v9  ;;  %v3779_v45 = vand.u32 4294901760, %v357_v42 }
 0x1cd   :  { %1340 = vmatpush.xpose.msrb.mxu2 %v3709_v32  ;;  %4618 = vst [vmem:[#allocation27_spill] sm:$0xff] %v3761_v16 }
 0x1ce   :  { %520 = vmatmul.f32.gmra.mxu0 %v4621_v40  ;;  %953 = vmatmul.f32.gmra.mxu3 %v3319_v25  ;;  %v527_v40 = vand.u32 4294901760, %v526_v0  ;;  %v540_v0 = vsub.f32 %v357_v42, %v3779_v45 }
 0x1cf   :  { %1506 = vmatpush.xpose.msra.mxu3 %v3446_v57  ;;  %1547 = vmatpush.xpose.msra.mxu0 %v4616_v43  ;;  %v4622_v43 = vld [vmem:[#allocation20_spill] sm:$0xff] }
 0x1d0   :  { %1157 = vmatpush.xpose.msrb.mxu1 %v3484_v20  ;;  %831 = vmatmul.f32.gmra.mxu2 %v4622_v43 }
 0x1d1   :  { %1453 = vmatpush.xpose.msra.mxu2 %v4615_v47  ;;  %705 = vmatmul.f32.gmra.mxu1 %v3690_v54  ;;  %v1234_v47 = vld [vmem:[#allocation5 + $0x40] sm:$0xff] }
 0x1d2   :  { %1693 = vperm.xlu1 %2950, %v1234_v47   ;;  %v1236_v47 = vld [vmem:[#allocation5 + $0x50] sm:$0xff] }
 0x1d3   :  { %1508 = vmatpush.xpose.msra.mxu3 %v3456_v29  ;;  %1551 = vmatpush.xpose.msra.mxu0 %v4620_v17  ;;  %v4623_v17 = vand.u32 4294901760, %v3482_v62  ;;  %v214_v25 = vpop.xlane.xlu2 %213  ;;  %v250_v48 = vpop.xlane.xlu0 %249 }
 0x1d4   :  { %1159 = vmatpush.xpose.msrb.mxu1 %v3479_v51  ;;  %v254_v35 = vmul.f32 -0.5, %v214_v25  ;;  %v266_v11 = vmul.f32 -0.5, %v250_v48 }
 0x1d5   :  { %1456 = vmatpush.xpose.msra.mxu2 %v4619_v36  ;;  %v301_v36 = vld [vmem:[#allocation4 + $0x60] sm:$0xff] }
 0x1d6   :  { %528 = vmatmul.f32.gmra.mxu0 %v527_v40  ;;  %271 = vst.msk [vmem:[#allocation5 + $0x18] sm:$0xff] %vm267_vm6, %v254_v35  ;;  %959 = vmatmul.f32.gmra.mxu3 %v525_v37  ;;  %v4624_v37 = vand.u32 4294901760, %v3577_v30 }
 0x1d7   :  { %1510 = vmatpush.xpose.msra.mxu3 %v3465_v18  ;;  %1555 = vmatpush.xpose.msra.mxu0 %v4623_v17  ;;  %283 = vst.msk [vmem:[#allocation5 + $0x78] sm:$0xff] %vm267_vm6, %v266_v11  ;;  %v304_v17 = vld [vmem:[#allocation4 + $0x78] sm:$0xff] }
 0x1d8   :  { %1614 = vmatpush.xpose.msra.mxu1 %v3446_v57  ;;  %v534_v57 = vsub.f32 %v532_v9, %v533_v7  ;;  %836 = vmatmul.f32.gmra.mxu2 %v524_v49  ;;  %v1238_v49 = vld [vmem:[#allocation5 + $0x60] sm:$0xff] }
 0x1d9   :  { %1459 = vmatpush.xpose.msra.mxu2 %v3482_v62  ;;  %709 = vmatmul.f32.gmra.mxu1 %v4605_v56  ;;  %v360_v62 = vsel %vm46_vm0, %v301_v36, 0 }
 0x1da   :  { %v3796_v35 = vand.u32 4294901760, %v360_v62  ;;  %1703 = vperm.xlu1 %2950, %v1236_v47  }
 0x1db   :  { %1512 = vmatpush.xpose.msra.mxu3 %v3488_v24  ;;  %1559 = vmatpush.xpose.msra.mxu0 %v1370_v13  ;;  %v535_v13 = vand.u32 4294901760, %v534_v57 }
 0x1dc   :  { %1616 = vmatpush.xpose.msra.mxu1 %v3456_v29  ;;  %v541_v29 = vand.u32 4294901760, %v540_v0 }
 0x1dd   :  { %1462 = vmatpush.xpose.msra.mxu2 %v3509_v19  ;;  %v302_v19 = vld [vmem:[#allocation4 + $0x68] sm:$0xff] }
 0x1de   :  { %536 = vmatmul.f32.gmra.mxu0 %v535_v13  ;;  %v542_v11 = vsub.f32 %v540_v0, %v541_v29  ;;  %965 = vmatmul.f32.gmra.mxu3 %v533_v7 }
 0x1df   :  { %1514 = vmatpush.xpose.msra.mxu3 %v3504_v12  ;;  %1563 = vmatpush.xpose.msra.mxu0 %v1376_v5  ;;  %v548_v5 = vsub.f32 %v360_v62, %v3796_v35  ;;  %v4629_v62 = vand.u32 4294901760, %v3663_v61 }
 0x1e0   :  { %1618 = vmatpush.xpose.msra.mxu1 %v3465_v18  ;;  %v363_v18 = vsel %vm46_vm0, %v302_v19, 0  ;;  %841 = vmatmul.f32.gmra.mxu2 %v532_v9  ;;  %v4630_v19 = vand.u32 4294901760, %v3685_v60 }
 0x1e1   :  { %1465 = vmatpush.xpose.msra.mxu2 %v3520_v31  ;;  %713 = vmatmul.f32.gmra.mxu1 %v3738_v38  ;;  %v549_v31 = vand.u32 4294901760, %v548_v5 }
 0x1e2   :  { %1713 = vperm.xlu1 %2950, %v1238_v49   ;;  %v1235_v49 = vld [vmem:[#allocation5 + $0x48] sm:$0xff] }
 0x1e3   :  { %1516 = vmatpush.xpose.msra.mxu3 %v3522_v8  ;;  %1567 = vmatpush.xpose.msra.mxu0 %v1382_v34  ;;  %v3811_v34 = vand.u32 4294901760, %v363_v18  ;;  %v550_v9 = vsub.f32 %v548_v5, %v549_v31 }
 0x1e4   :  { %1620 = vmatpush.xpose.msra.mxu1 %v3488_v24  ;;  %v543_v24 = vand.u32 4294901760, %v542_v11  ;;  %1698 = vperm.xlu0 %2951, %v1235_v49  }
 0x1e5   :  { %1468 = vmatpush.xpose.msra.mxu2 %v3536_v15  ;;  %v303_v15 = vld [vmem:[#allocation4 + $0x70] sm:$0xff] }
 0x1e6   :  { %544 = vmatmul.f32.gmra.mxu0 %v543_v24  ;;  %971 = vmatmul.f32.gmra.mxu3 %v541_v29 }
 0x1e7   :  { %1518 = vmatpush.xpose.msra.mxu3 %v3541_v2  ;;  %1571 = vmatpush.xpose.msra.mxu0 %v1388_v3  ;;  %v556_v3 = vsub.f32 %v363_v18, %v3811_v34 }
 0x1e8   :  { %1622 = vmatpush.xpose.msra.mxu1 %v3504_v12  ;;  %v366_v12 = vsel %vm46_vm0, %v303_v15, 0  ;;  %846 = vmatmul.f32.gmra.mxu2 %v540_v0 }
 0x1e9   :  { %1471 = vmatpush.xpose.msra.mxu2 %v3560_v52  ;;  %717 = vmatmul.f32.gmra.mxu1 %v3756_v58  ;;  %v4625_v52 = vand.u32 4294901760, %v3594_v21  ;;  %v557_v42 = vand.u32 4294901760, %v556_v3  ;;  %v3826_v43 = vand.u32 4294901760, %v366_v12 }
 0x1eb   :  { %1520 = vmatpush.xpose.msra.mxu3 %v3562_v28  ;;  %1575 = vmatpush.xpose.msra.mxu0 %v4624_v37  ;;  %v558_v40 = vsub.f32 %v556_v3, %v557_v42  ;;  %v564_v7 = vsub.f32 %v366_v12, %v3826_v43  ;;  %v1229_v12 = vld [vmem:[#allocation5 + $0x18] sm:$0xff] }
 0x1ec   :  { %1624 = vmatpush.xpose.msra.mxu1 %v3522_v8  ;;  %v551_v8 = vand.u32 4294901760, %v550_v9  ;;  %v4634_v9 = vmov 0.0  }
 0x1ed   :  { %1474 = vmatpush.xpose.msra.mxu2 %v3577_v30  ;;  %v4626_v30 = vand.u32 4294901760, %v3606_v26  ;;  %v565_v25 = vand.u32 4294901760, %v564_v7 }
 0x1ee   :  { %552 = vmatmul.f32.gmra.mxu0 %v551_v8  ;;  %977 = vmatmul.f32.gmra.mxu3 %v549_v31 }
 0x1ef   :  { %1522 = vmatpush.xpose.msra.mxu3 %v3579_v6  ;;  %1579 = vmatpush.xpose.msra.mxu0 %v4625_v52  ;;  %v566_v36 = vsub.f32 %v564_v7, %v565_v25 }
 0x1f0   :  { %1626 = vmatpush.xpose.msra.mxu1 %v3541_v2  ;;  %v369_v2 = vsel %vm46_vm0, %v304_v17, 0  ;;  %851 = vmatmul.f32.gmra.mxu2 %v548_v5 }
 0x1f1   :  { %1477 = vmatpush.xpose.msra.mxu2 %v3594_v21  ;;  %721 = vmatmul.f32.gmra.mxu1 %v3779_v45  ;;  %v4627_v21 = vand.u32 4294901760, %v3627_v10  ;;  %v3841_v48 = vand.u32 4294901760, %v369_v2  ;;  %v567_v13 = vand.u32 4294901760, %v566_v36 }
 0x1f3   :  { %1524 = vmatpush.xpose.msra.mxu3 %v3586_v39  ;;  %1583 = vmatpush.xpose.msra.mxu0 %v4626_v30  ;;  %v572_v57 = vsub.f32 %v369_v2, %v3841_v48 }
 0x1f4   :  { %1628 = vmatpush.xpose.msra.mxu1 %v3562_v28  ;;  %v559_v28 = vand.u32 4294901760, %v558_v40 }
 0x1f5   :  { %1480 = vmatpush.xpose.msra.mxu2 %v3606_v26  ;;  %v4628_v26 = vand.u32 4294901760, %v3646_v33  ;;  %v573_v29 = vand.u32 4294901760, %v572_v57 }
 0x1f6   :  { %560 = vmatmul.f32.gmra.mxu0 %v559_v28  ;;  %983 = vmatmul.f32.gmra.mxu3 %v557_v42 }
 0x1f7   :  { %1526 = vmatpush.xpose.msra.mxu3 %v3613_v4  ;;  %1587 = vmatpush.xpose.msra.mxu0 %v4627_v21  ;;  %v4635_v21 = vmov 0  }
 0x1f8   :  { %1630 = vmatpush.xpose.msra.mxu1 %v3579_v6  ;;  %v244_v6 = vpop.xlane.xlu1 %243  ;;  %856 = vmatmul.f32.gmra.mxu2 %v556_v3 }
 0x1f9   :  { %1483 = vmatpush.xpose.msra.mxu2 %v3627_v10  ;;  %725 = vmatmul.f32.gmra.mxu1 %v3796_v35  ;;  %v205_v0 = vpop.xlane.xlu2 %204  ;;  %v264_v10 = vmul.f32 -0.5, %v244_v6 }
 0x1fa   :  { %v251_v47 = vmul.f32 -0.5, %v205_v0 }
 0x1fb   :  { %1528 = vmatpush.xpose.msra.mxu3 %v3629_v63  ;;  %1591 = vmatpush.xpose.msra.mxu0 %v4628_v26  ;;  %281 = vst.msk [vmem:[#allocation5 + $0x68] sm:$0xff] %vm267_vm6, %v264_v10 }
 0x1fc   :  { %1632 = vmatpush.xpose.msra.mxu1 %v3586_v39  ;;  %v208_v39 = vpop.xlane.xlu0 %207  ;;  %268 = vst.msk [vmem:[#allocation5] sm:$0xff] %vm267_vm6, %v251_v47 }
 0x1fd   :  { %1486 = vmatpush.xpose.msra.mxu2 %v3646_v33  ;;  %v252_v33 = vmul.f32 -0.5, %v208_v39 }
 0x1fe   :  { %568 = vmatmul.f32.gmra.mxu0 %v567_v13  ;;  %989 = vmatmul.f32.gmra.mxu3 %v565_v25 }
 0x1ff   :  { %1530 = vmatpush.xpose.msra.mxu3 %v3648_v50  ;;  %1595 = vmatpush.xpose.msra.mxu0 %v4629_v62  ;;  %269 = vst.msk [vmem:[#allocation5 + $0x8] sm:$0xff] %vm267_vm6, %v252_v33 }
 0x200   :  { %1634 = vmatpush.xpose.msra.mxu1 %v3613_v4  ;;  %v574_v4 = vsub.f32 %v572_v57, %v573_v29  ;;  %v3865_v11 = vpop.permute.xlu1 %1673  ;;  %861 = vmatmul.f32.gmra.mxu2 %v564_v7 }
 0x201   :  { %1489 = vmatpush.xpose.msra.mxu2 %v3663_v61  ;;  %729 = vmatmul.f32.gmra.mxu1 %v3811_v34  ;;  %4631 = vst [vmem:[#allocation31_spill] sm:$0xff] %v3865_v11  ;;  %v4632_v61 = vand.u32 4294901760, %v3706_v14 }
 0x202   :  { %v575_v18 = vand.u32 4294901760, %v574_v4 }
 0x203   :  { %1532 = vmatpush.xpose.msra.mxu3 %v3665_v41  ;;  %1599 = vmatpush.xpose.msra.mxu0 %v4630_v19  ;;  %v1226_v5 = vld [vmem:[#allocation5] sm:$0xff] }
 0x204   :  { %1636 = vmatpush.xpose.msra.mxu1 %v3629_v63  ;;  %1653 = vperm.xlu1 %2950, %v1226_v5   ;;  %v4633_v63 = vand.u32 4294901760, %v3720_v23 }
 0x205   :  { %1492 = vmatpush.xpose.msra.mxu2 %v3685_v60 }
 0x206   :  { %576 = vmatmul.f32.gmra.mxu0 %v575_v18  ;;  %995 = vmatmul.f32.gmra.mxu3 %v573_v29 }
 0x207   :  { %1534 = vmatpush.xpose.msra.mxu3 %v3688_v53  ;;  %1603 = vmatpush.xpose.msra.mxu0 %v4632_v61 }
 0x208   :  { %1638 = vmatpush.xpose.msra.mxu1 %v3648_v50  ;;  %v211_v60 = vpop.xlane.xlu1 %210  ;;  %v1237_v50 = vld [vmem:[#allocation5 + $0x58] sm:$0xff]  ;;  %866 = vmatmul.f32.gmra.mxu2 %v572_v57 }
 0x209   :  { %1495 = vmatpush.xpose.msra.mxu2 %v3706_v14  ;;  %733 = vmatmul.f32.gmra.mxu1 %v3826_v43  ;;  %v253_v24 = vmul.f32 -0.5, %v211_v60  ;;  %v1227_v14 = vld [vmem:[#allocation5 + $0x8] sm:$0xff] }
 0x20a   :  { %1708 = vperm.xlu2 %2952, %v1237_v50  }
 0x20b   :  { %1536 = vmatpush.xpose.msra.mxu3 %v3709_v32  ;;  %1607 = vmatpush.xpose.msra.mxu0 %v4633_v63  ;;  %270 = vst.msk [vmem:[#allocation5 + $0x10] sm:$0xff] %vm267_vm6, %v253_v24  ;;  %v3880_v31 = vpop.f32.mrf.mxu0 }
 0x20c   :  { %1640 = vmatpush.xpose.msra.mxu1 %v3665_v41  ;;  %1658 = vperm.xlu1 %2950, %v1227_v14  }
 0x20d   :  { %1498 = vmatpush.xpose.msra.mxu2 %v3720_v23  ;;  %v1239_v23 = vld [vmem:[#allocation5 + $0x68] sm:$0xff] }
 0x20e   :  { %1064 = vmatmul.f32.vlgmr.msrb.gmra.mxu0 %v3479_v51  ;;  %1718 = vperm.xlu0 %2951, %v1239_v23  }
 0x210   :  { %1642 = vmatpush.xpose.msra.mxu1 %v3688_v53  ;;  %v1240_v53 = vld [vmem:[#allocation5 + $0x70] sm:$0xff] }
 0x211   :  { %737 = vmatmul.f32.gmra.mxu1 %v3841_v48  ;;  %v3956_v47 = vpop.f32.mrf.mxu3 }
 0x212   :  { %v1228_v41 = vld [vmem:[#allocation5 + $0x10] sm:$0xff] }
 0x213   :  { %1663 = vperm.xlu2 %2952, %v1228_v41   ;;  %v3887_v37 = vpop.f32.mrf.mxu0  ;;  %v3950_v10 = vpop.f32.mrf.mxu2 }
 0x214   :  { %1644 = vmatpush.xpose.msra.mxu1 %v3709_v32 }
 0x216   :  { %v3885_v15 = vpop.f32.mrf.mxu1  ;;  %1068 = vmatmul.f32.gmra.mxu0 %v3484_v20  ;;  %1723 = vperm.xlu0 %2951, %v1240_v53  }
 0x219   :  { %1161 = vmatmul.f32.vlgmr.msrb.gmra.mxu1 %v3479_v51  ;;  %v3968_v29 = vpop.f32.mrf.mxu3 }
 0x21a   :  { %2343 = vmatpush.msrb.mxu1 %v4634_v9  ;;  %4636 = vst [vmem:[#allocation21_spill] sm:$0xff] %v3968_v29 }
 0x21b   :  { %v3894_v3 = vpop.f32.mrf.mxu0  ;;  %v3962_v39 = vpop.f32.mrf.mxu2 }
 0x21e   :  { %v3892_v32 = vpop.f32.mrf.mxu1  ;;  %1072 = vmatmul.f32.gmra.mxu0 %v3405_v44  ;;  %1668 = vperm.xlu0 %2951, %v1229_v12  }
 0x221   :  { %1165 = vmatmul.f32.gmra.mxu1 %v3484_v20 }
 0x223   :  { %v3900_v8 = vpop.f32.mrf.mxu0  ;;  %v3972_v19 = vpop.f32.mrf.mxu2 }
 0x226   :  { %v3898_v52 = vpop.f32.mrf.mxu1  ;;  %1076 = vmatmul.f32.gmra.mxu0 %v3396_v55 }
 0x229   :  { %1169 = vmatmul.f32.gmra.mxu1 %v3405_v44 }
 0x22b   :  { %v3906_v42 = vpop.f32.mrf.mxu0  ;;  %v3982_v18 = vpop.f32.mrf.mxu2 }
 0x22e   :  { %v3904_v51 = vpop.f32.mrf.mxu1  ;;  %1080 = vmatmul.f32.gmra.mxu0 %v4609_v46 }
 0x231   :  { %1173 = vmatmul.f32.gmra.mxu1 %v3396_v55  ;;  %v1241_v55 = vld [vmem:[#allocation5 + $0x78] sm:$0xff] }
 0x232   :  { %1728 = vperm.xlu1 %2950, %v1241_v55  }
 0x233   :  { %v3912_v20 = vpop.f32.mrf.mxu0 }
 0x236   :  { %v3910_v17 = vpop.f32.mrf.mxu1  ;;  %1084 = vmatmul.f32.gmra.mxu0 %v4613_v1 }
 0x239   :  { %1177 = vmatmul.f32.gmra.mxu1 %v4609_v46 }
 0x23b   :  { %v3918_v40 = vpop.f32.mrf.mxu0 }
 0x23e   :  { %v3916_v30 = vpop.f32.mrf.mxu1  ;;  %1088 = vmatmul.f32.gmra.mxu0 %v3653_v59 }
 0x241   :  { %1181 = vmatmul.f32.gmra.mxu1 %v4613_v1  ;;  %v1259_v1 = vsel %vm46_vm0, 1.0, %v4635_v21 }
 0x242   :  { %v1342_v25 = vsub.f32 %v1259_v1, %v1259_v1 }
 0x243   :  { %v3924_v7 = vpop.f32.mrf.mxu0 }
 0x246   :  { %v3922_v44 = vpop.f32.mrf.mxu1  ;;  %1092 = vmatmul.f32.gmra.mxu0 %v3690_v54 }
 0x249   :  { %1185 = vmatmul.f32.gmra.mxu1 %v3653_v59  ;;  %v1343_v59 = vand.u32 4294901760, %v1342_v25 }
 0x24b   :  { %v3930_v46 = vpop.f32.mrf.mxu0  ;;  %v1344_v36 = vsub.f32 %v1342_v25, %v1343_v59 }
 0x24d   :  { %v1345_v0 = vand.u32 4294901760, %v1344_v36 }
 0x24e   :  { %v3928_v2 = vpop.f32.mrf.mxu1  ;;  %1096 = vmatmul.f32.gmra.mxu0 %v4605_v56 }
 0x24f   :  { %1346 = vmatmul.f32.vlgmr.msrb.gmra.mxu2 %v1345_v0 }
 0x251   :  { %1189 = vmatmul.f32.gmra.mxu1 %v3690_v54  ;;  %v3071_v54 = vmov 1.0  }
 0x252   :  { %2922 = vmatmul.msk.f32.vlgmr.msrb.gmra.mxu3 %vm46_vm0, %v3071_v54 }
 0x253   :  { %v3936_v28 = vpop.f32.mrf.mxu0  ;;  %2929 = vmatpush.msrb.mxu3 %v4634_v9 }
 0x256   :  { %v3938_v26 = vpop.f32.mrf.mxu1  ;;  %1100 = vmatmul.f32.gmra.mxu0 %v3738_v38 }
 0x257   :  { %1501 = vmatmul.f32.vlgmr.msra.gmra.mxu2 %v1342_v25 }
 0x259   :  { %1193 = vmatmul.f32.gmra.mxu1 %v4605_v56 }
 0x25a   :  { %1540 = vmatmul.f32.vlgmr.msra.gmra.mxu3 %v1343_v59 }
 0x25b   :  { %v3942_v57 = vpop.f32.mrf.mxu0 }
 0x25e   :  { %v3944_v6 = vpop.f32.mrf.mxu1  ;;  %1104 = vmatmul.f32.gmra.mxu0 %v3756_v58 }
 0x261   :  { %1197 = vmatmul.f32.gmra.mxu1 %v3738_v38 }
 0x263   :  { %v3952_v56 = vpop.f32.mrf.mxu0 }
 0x266   :  { %v3954_v62 = vpop.f32.mrf.mxu1  ;;  %1108 = vmatmul.f32.gmra.mxu0 %v3779_v45 }
 0x269   :  { %1201 = vmatmul.f32.gmra.mxu1 %v3756_v58  ;;  %v3978_v58 = vpop.f32.mrf.mxu3 }
 0x26a   :  { %4637 = vst [vmem:[#allocation26_spill] sm:$0xff] %v3978_v58 }
 0x26b   :  { %v3960_v38 = vpop.f32.mrf.mxu0 }
 0x26e   :  { %v3964_v13 = vpop.f32.mrf.mxu1  ;;  %1112 = vmatmul.f32.gmra.mxu0 %v3796_v35 }
 0x271   :  { %1205 = vmatmul.f32.gmra.mxu1 %v3779_v45  ;;  %v3986_v45 = vpop.f32.mrf.mxu3 }
 0x272   :  { %4638 = vst [vmem:[#allocation28_spill] sm:$0xff] %v3986_v45  ;;  %v3072_v45 = vmov -0.125  }
 0x273   :  { %v3970_v33 = vpop.f32.mrf.mxu0  ;;  %2927 = vmatpush.msrb.mxu2 %v3072_v45  ;;  %2133 = vmatpush.msrb.mxu0 %v3072_v45 }
 0x274   :  { %2762 = vmatpush.msra.mxu3 %v3072_v45 }
 0x276   :  { %v3974_v4 = vpop.f32.mrf.mxu1  ;;  %1116 = vmatmul.f32.gmra.mxu0 %v3811_v34 }
 0x279   :  { %1209 = vmatmul.f32.gmra.mxu1 %v3796_v35  ;;  %v3992_v35 = vpop.f32.mrf.mxu2  ;;  %v3996_v50 = vpop.f32.mrf.mxu3 }
 0x27a   :  { %4640 = vst [vmem:[#allocation22_spill] sm:$0xff] %v3996_v50 }
 0x27b   :  { %v3980_v61 = vpop.f32.mrf.mxu0 }
 0x27e   :  { %v730_v5 = vpop.f32.mrf.mxu1  ;;  %1120 = vmatmul.f32.gmra.mxu0 %v3826_v43 }
 0x281   :  { %1213 = vmatmul.f32.gmra.mxu1 %v3811_v34  ;;  %v4002_v34 = vpop.f32.mrf.mxu2  ;;  %v4008_v41 = vpop.f32.mrf.mxu3 }
 0x282   :  { %4643 = vst [vmem:[#allocation30_spill] sm:$0xff] %v4008_v41 }
 0x283   :  { %v3988_v63 = vpop.f32.mrf.mxu0 }
 0x286   :  { %v734_v60 = vpop.f32.mrf.mxu1  ;;  %1124 = vmatmul.f32.gmra.mxu0 %v3841_v48 }
 0x289   :  { %1217 = vmatmul.f32.gmra.mxu1 %v3826_v43  ;;  %v4013_v53 = vpop.f32.mrf.mxu2  ;;  %v4017_v55 = vpop.f32.mrf.mxu3 }
 0x28a   :  { %4646 = vst [vmem:[#allocation33_spill] sm:$0xff] %v4017_v55 }
 0x28b   :  { %v3994_v49 = vpop.f32.mrf.mxu0 }
 0x28c   :  { %4639 = vst [vmem:[#allocation25_spill] sm:$0xff] %v3994_v49 }
 0x28e   :  { %v3998_v24 = vpop.f32.mrf.mxu1  ;;  %2923 = vmatmul.msk.f32.vlgmr.msra.gmra.mxu0 %vm46_vm0, %v3071_v54 }
 0x291   :  { %1221 = vmatmul.f32.gmra.mxu1 %v3841_v48  ;;  %v4023_v1 = vpop.f32.mrf.mxu2  ;;  %v4025_v25 = vpop.f32.mrf.mxu3 }
 0x292   :  { %4649 = vst [vmem:[#allocation36_spill] sm:$0xff] %v4025_v25  ;;  %v4083_v25 = vpop.permute.xlu1 %1693 }
 0x293   :  { %v4004_v14 = vpop.f32.mrf.mxu0  ;;  %4673 = vst [vmem:[#allocation60_spill] sm:$0xff] %v4083_v25 }
 0x294   :  { %4641 = vst [vmem:[#allocation24_spill] sm:$0xff] %v4004_v14 }
 0x296   :  { %v4006_v23 = vpop.f32.mrf.mxu1 }
 0x297   :  { %4642 = vst [vmem:[#allocation29_spill] sm:$0xff] %v4006_v23 }
 0x299   :  { %2924 = vmatmul.msk.f32.vlgmr.msra.gmra.mxu1 %vm46_vm0, %v3071_v54  ;;  %v4031_v0 = vpop.f32.mrf.mxu2  ;;  %v4035_v27 = vpop.f32.mrf.mxu3 }
 0x29a   :  { %4653 = vst [vmem:[#allocation40_spill] sm:$0xff] %v4035_v27  ;;  %2536 = vmatpush.msra.mxu1 %v3072_v45 }
 0x29b   :  { %v4011_v43 = vpop.f32.mrf.mxu0 }
 0x29c   :  { %4644 = vst [vmem:[#allocation23_spill] sm:$0xff] %v4011_v43 }
 0x29e   :  { %v4015_v12 = vpop.f32.mrf.mxu1 }
 0x29f   :  { %4645 = vst [vmem:[#allocation20_spill] sm:$0xff] %v4015_v12 }
 0x2a1   :  { %v4039_v16 = vpop.f32.mrf.mxu2 }
 0x2a3   :  { %v4019_v21 = vpop.f32.mrf.mxu0 }
 0x2a4   :  { %4647 = vst [vmem:[#allocation34_spill] sm:$0xff] %v4019_v21 }
 0x2a6   :  { %v4021_v48 = vpop.f32.mrf.mxu1 }
 0x2a7   :  { %4648 = vst [vmem:[#allocation35_spill] sm:$0xff] %v4021_v48  ;;  %v4045_v48 = vpop.f32.mrf.mxu3 }
 0x2a8   :  { %4657 = vst [vmem:[#allocation44_spill] sm:$0xff] %v4045_v48 }
 0x2ab   :  { %v4027_v59 = vpop.f32.mrf.mxu0 }
 0x2ac   :  { %4650 = vst [vmem:[#allocation37_spill] sm:$0xff] %v4027_v59  ;;  %v4049_v59 = vpop.f32.mrf.mxu2 }
 0x2ae   :  { %v4029_v36 = vpop.f32.mrf.mxu1 }
 0x2af   :  { %4651 = vst [vmem:[#allocation38_spill] sm:$0xff] %v4029_v36  ;;  %v4053_v43 = vpop.f32.mrf.mxu3 }
 0x2b0   :  { %4660 = vst [vmem:[#allocation47_spill] sm:$0xff] %v4053_v43 }
 0x2b3   :  { %v4033_v54 = vpop.f32.mrf.mxu0 }
 0x2b4   :  { %4652 = vst [vmem:[#allocation39_spill] sm:$0xff] %v4033_v54 }
 0x2b6   :  { %v4037_v22 = vpop.f32.mrf.mxu1 }
 0x2b7   :  { %4654 = vst [vmem:[#allocation41_spill] sm:$0xff] %v4037_v22  ;;  %v4059_v22 = vpop.f32.mrf.mxu2  ;;  %v4061_v23 = vpop.f32.mrf.mxu3 }
 0x2b8   :  { %4663 = vst [vmem:[#allocation50_spill] sm:$0xff] %v4061_v23 }
 0x2bb   :  { %v4041_v11 = vpop.f32.mrf.mxu0 }
 0x2bc   :  { %4655 = vst [vmem:[#allocation42_spill] sm:$0xff] %v4041_v11 }
 0x2be   :  { %v4043_v9 = vpop.f32.mrf.mxu1 }
 0x2bf   :  { %4656 = vst [vmem:[#allocation43_spill] sm:$0xff] %v4043_v9  ;;  %v4067_v14 = vpop.f32.mrf.mxu2  ;;  %v4071_v48 = vpop.f32.mrf.mxu3 }
 0x2c0   :  { %4667 = vst [vmem:[#allocation54_spill] sm:$0xff] %v4071_v48 }
 0x2c3   :  { %v4047_v21 = vpop.f32.mrf.mxu0 }
 0x2c4   :  { %4658 = vst [vmem:[#allocation45_spill] sm:$0xff] %v4047_v21 }
 0x2c6   :  { %v4051_v36 = vpop.f32.mrf.mxu1 }
 0x2c7   :  { %4659 = vst [vmem:[#allocation46_spill] sm:$0xff] %v4051_v36  ;;  %v857_v43 = vpop.f32.mrf.mxu2  ;;  %v984_v27 = vpop.f32.mrf.mxu3 }
 0x2cb   :  { %v4055_v54 = vpop.f32.mrf.mxu0 }
 0x2cc   :  { %4661 = vst [vmem:[#allocation48_spill] sm:$0xff] %v4055_v54 }
 0x2ce   :  { %v4057_v12 = vpop.f32.mrf.mxu1 }
 0x2cf   :  { %4662 = vst [vmem:[#allocation49_spill] sm:$0xff] %v4057_v12  ;;  %v862_v23 = vpop.f32.mrf.mxu2 }
 0x2d3   :  { %v4063_v11 = vpop.f32.mrf.mxu0 }
 0x2d4   :  { %4664 = vst [vmem:[#allocation51_spill] sm:$0xff] %v4063_v11 }
 0x2d6   :  { %v4065_v9 = vpop.f32.mrf.mxu1 }
 0x2d7   :  { %4665 = vst [vmem:[#allocation52_spill] sm:$0xff] %v4065_v9  ;;  %v990_v9 = vpop.f32.mrf.mxu3  ;;  %v867_v41 = vpop.f32.mrf.mxu2 }
 0x2db   :  { %v4069_v21 = vpop.f32.mrf.mxu0 }
 0x2dc   :  { %4666 = vst [vmem:[#allocation53_spill] sm:$0xff] %v4069_v21  ;;  %v731_v21 = vadd.f32 %v730_v5, %v3970_v33  ;;  %v4091_v5 = vpop.permute.xlu0 %1698 }
 0x2de   :  { %v4073_v36 = vpop.f32.mrf.mxu1 }
 0x2df   :  { %4668 = vst [vmem:[#allocation55_spill] sm:$0xff] %v4073_v36  ;;  %v858_v36 = vadd.f32 %v857_v43, %v731_v21  ;;  %v1347_v43 = vpop.f32.mrf.mxu2 }
 0x2e1   :  { %v985_v50 = vadd.f32 %v984_v27, %v858_v36 }
 0x2e3   :  { %v4075_v54 = vpop.f32.mrf.mxu0 }
 0x2e4   :  { %4669 = vst [vmem:[#allocation56_spill] sm:$0xff] %v4075_v54  ;;  %v735_v54 = vadd.f32 %v734_v60, %v3980_v61  ;;  %v739_v61 = vadd.f32 %v3998_v24, %v3988_v63  ;;  %v691_v24 = vadd.f32 %v3904_v51, %v3900_v8  ;;  %v719_v8 = vadd.f32 %v3954_v62, %v3942_v57 }
 0x2e6   :  { %v4077_v12 = vpop.f32.mrf.mxu1  ;;  %v863_v33 = vadd.f32 %v862_v23, %v735_v54  ;;  %v868_v29 = vadd.f32 %v867_v41, %v739_v61  ;;  %v695_v41 = vadd.f32 %v3910_v17, %v3906_v42  ;;  %v699_v54 = vadd.f32 %v3916_v30, %v3912_v20  ;;  %v4682_v61 = vld [vmem:[#allocation36_spill] sm:$0xff] }
 0x2e7   :  { %4670 = vst [vmem:[#allocation57_spill] sm:$0xff] %v4077_v12  ;;  %v996_v12 = vpop.f32.mrf.mxu3  ;;  %v723_v20 = vadd.f32 %v3964_v13, %v3952_v56  ;;  %v727_v30 = vadd.f32 %v3974_v4, %v3960_v38  ;;  %v843_v56 = vadd.f32 %v4049_v59, %v719_v8  ;;  %v4692_v8 = vld [vmem:[#allocation23_spill] sm:$0xff] }
 0x2e8   :  { %v991_v27 = vadd.f32 %v990_v9, %v863_v33  ;;  %v683_v9 = vadd.f32 %v3892_v32, %v3887_v37  ;;  %v997_v63 = vadd.f32 %v996_v12, %v868_v29  ;;  %v4680_v33 = vld [vmem:[#allocation30_spill] sm:$0xff] }
 0x2e9   :  { %v853_v13 = vadd.f32 %v4067_v14, %v727_v30 }
 0x2ea   :  { %v798_v17 = vadd.f32 %v3962_v39, %v683_v9  ;;  %v848_v39 = vadd.f32 %v4059_v22, %v723_v20  ;;  %v4694_v20 = vld [vmem:[#allocation37_spill] sm:$0xff] }
 0x2eb   :  { %v4079_v49 = vpop.f32.mrf.mxu0 }
 0x2ec   :  { %4671 = vst [vmem:[#allocation58_spill] sm:$0xff] %v4079_v49  ;;  %v4089_v49 = vpop.permute.xlu1 %1703 }
 0x2ed   :  { %4675 = vst [vmem:[#allocation62_spill] sm:$0xff] %v4089_v49 }
 0x2ee   :  { %v4081_v11 = vpop.f32.mrf.mxu1 }
 0x2ef   :  { %4672 = vst [vmem:[#allocation59_spill] sm:$0xff] %v4081_v11  ;;  %v1448_v60 = vpop.f32.mrf.mxu3 }
 0x2f0   :  { %v1449_v23 = vadd.f32 %v1448_v60, %v1347_v43  ;;  %v4683_v60 = vld [vmem:[#allocation25_spill] sm:$0xff] }
 0x2f3   :  { %v1117_v55 = vpop.f32.mrf.mxu0 }
 0x2f4   :  { %v1118_v11 = vadd.f32 %v1117_v55, %v985_v50  ;;  %v4099_v50 = vpop.permute.xlu1 %1713  ;;  %v4101_v55 = vpop.permute.xlu0 %1718 }
 0x2f6   :  { %v4086_v48 = vpop.f32.mrf.mxu1 }
 0x2f7   :  { %4674 = vst [vmem:[#allocation61_spill] sm:$0xff] %v4086_v48  ;;  %v1541_v51 = vpop.f32.mrf.mxu3 }
 0x2fb   :  { %v1121_v58 = vpop.f32.mrf.mxu0 }
 0x2fc   :  { %v1122_v21 = vadd.f32 %v1121_v58, %v991_v27  ;;  %v687_v58 = vadd.f32 %v3898_v52, %v3894_v3  ;;  %v711_v3 = vadd.f32 %v3938_v26, %v3930_v46  ;;  %v715_v52 = vadd.f32 %v3944_v6, %v3936_v28  ;;  %v1654_v62 = vpop.permute.xlu1 %1653  ;;  %v4681_v27 = vld [vmem:[#allocation33_spill] sm:$0xff] }
 0x2fd   :  { %v818_v46 = vadd.f32 %v4002_v34, %v699_v54  ;;  %v4148_v34 = vpop.permute.xlu0 %1723 }
 0x2fe   :  { %v1214_v25 = vpop.f32.mrf.mxu1  ;;  %v833_v6 = vadd.f32 %v4031_v0, %v711_v3  ;;  %v4679_v0 = vld [vmem:[#allocation22_spill] sm:$0xff]  ;;  %v4691_v3 = vld [vmem:[#allocation20_spill] sm:$0xff] }
 0x2ff   :  { %v4093_v48 = vadd.f32 %v1214_v25, %v1118_v11  ;;  %v679_v11 = vadd.f32 %v3885_v15, %v3880_v31  ;;  %v1502_v25 = vpop.f32.mrf.mxu2  ;;  %v703_v31 = vadd.f32 %v3922_v44, %v3918_v40  ;;  %v707_v15 = vadd.f32 %v3928_v2, %v3924_v7 }
 0x300   :  { %v1503_v32 = vadd.f32 %v1502_v25, %v1449_v23  ;;  %v803_v44 = vadd.f32 %v3972_v19, %v687_v58  ;;  %v808_v7 = vadd.f32 %v3982_v18, %v691_v24  ;;  %v813_v2 = vadd.f32 %v3992_v35, %v695_v41  ;;  %v4144_v19 = vpop.permute.xlu2 %1708  ;;  %v4676_v18 = vld [vmem:[#allocation21_spill] sm:$0xff]  ;;  %v4685_v23 = vld [vmem:[#allocation44_spill] sm:$0xff]  ;;  %v4686_v25 = vld [vmem:[#allocation47_spill] sm:$0xff] }
 0x301   :  { %v793_v29 = vadd.f32 %v3950_v10, %v679_v11  ;;  %v823_v28 = vadd.f32 %v4013_v53, %v703_v31  ;;  %v828_v26 = vadd.f32 %v4023_v1, %v707_v15  ;;  %v838_v10 = vadd.f32 %v4039_v16, %v715_v52  ;;  %v4677_v53 = vld [vmem:[#allocation26_spill] sm:$0xff]  ;;  %v4678_v1 = vld [vmem:[#allocation28_spill] sm:$0xff] }
 0x302   :  { %v1542_v57 = vadd.f32 %v1541_v51, %v1503_v32  ;;  %v913_v35 = vadd.f32 %v4676_v18, %v798_v17  ;;  %v919_v12 = vadd.f32 %v4677_v53, %v803_v44  ;;  %v925_v16 = vadd.f32 %v4678_v1, %v808_v7  ;;  %v4688_v41 = vld [vmem:[#allocation50_spill] sm:$0xff]  ;;  %v4695_v44 = vld [vmem:[#allocation39_spill] sm:$0xff] }
 0x303   :  { %v1125_v45 = vpop.f32.mrf.mxu0  ;;  %v907_v4 = vadd.f32 %v3956_v47, %v793_v29  ;;  %v931_v59 = vadd.f32 %v4679_v0, %v813_v2  ;;  %v937_v43 = vadd.f32 %v4680_v33, %v818_v46  ;;  %v943_v22 = vadd.f32 %v4681_v27, %v823_v28  ;;  %v4684_v47 = vld [vmem:[#allocation40_spill] sm:$0xff]  ;;  %v4689_v31 = vld [vmem:[#allocation54_spill] sm:$0xff]  ;;  %v4701_v18 = vld [vmem:[#allocation43_spill] sm:$0xff] }
 0x304   :  { %v1126_v37 = vadd.f32 %v1125_v45, %v997_v63  ;;  %v949_v14 = vadd.f32 %v4682_v61, %v828_v26  ;;  %v955_v45 = vadd.f32 %v4684_v47, %v833_v6  ;;  %v961_v11 = vadd.f32 %v4685_v23, %v838_v10  ;;  %v4687_v63 = vld [vmem:[#allocation24_spill] sm:$0xff]  ;;  %v4696_v2 = vld [vmem:[#allocation42_spill] sm:$0xff]  ;;  %v4697_v26 = vld [vmem:[#allocation35_spill] sm:$0xff]  ;;  %v1659_v0 = vpop.permute.xlu1 %1658 }
 0x305   :  { %v967_v9 = vadd.f32 %v4686_v25, %v843_v56  ;;  %v1070_v58 = vadd.f32 %v4687_v63, %v913_v35  ;;  %v4162_v54 = vadd.f32 %v4688_v41, %v848_v39  ;;  %v4165_v15 = vadd.f32 %v4689_v31, %v853_v13  ;;  %v4698_v6 = vld [vmem:[#allocation38_spill] sm:$0xff]  ;;  %v4699_v56 = vld [vmem:[#allocation45_spill] sm:$0xff]  ;;  %v4708_v25 = vld [vmem:[#allocation27_spill] sm:$0xff] }
 0x306   :  { %v1218_v36 = vpop.f32.mrf.mxu1  ;;  %v1074_v51 = vadd.f32 %v4692_v8, %v919_v12  ;;  %v1082_v30 = vadd.f32 %v4694_v20, %v931_v59  ;;  %v1086_v7 = vadd.f32 %v4695_v44, %v937_v43  ;;  %v1090_v46 = vadd.f32 %v4696_v2, %v943_v22  ;;  %v4700_v13 = vld [vmem:[#allocation41_spill] sm:$0xff]  ;;  %v4702_v53 = vld [vmem:[#allocation46_spill] sm:$0xff]  ;;  %v4705_v43 = vld [vmem:[#allocation48_spill] sm:$0xff] }
 0x307   :  { %v4097_v49 = vadd.f32 %v1218_v36, %v1122_v21  ;;  %v1066_v21 = vadd.f32 %v4683_v60, %v907_v4  ;;  %v1167_v52 = vadd.f32 %v4691_v3, %v1070_v58  ;;  %v3073_v39 = vmov 0.125   ;;  %v4704_v59 = vld [vmem:[#allocation49_spill] sm:$0xff]  ;;  %v4706_v22 = vld [vmem:[#allocation51_spill] sm:$0xff]  ;;  %v1669_v60 = vpop.permute.xlu0 %1668  ;;  %v4711_v2 = vld [vmem:[#allocation52_spill] sm:$0xff] }
 0x308   :  { %2928 = vmatpush.msrb.mxu2 %v3073_v39  ;;  %2134 = vmatpush.msrb.mxu0 %v3073_v39  ;;  %v1179_v4 = vadd.f32 %v4700_v13, %v1082_v30  ;;  %v1183_v35 = vadd.f32 %v4701_v18, %v1086_v7  ;;  %v1187_v12 = vadd.f32 %v4702_v53, %v1090_v46  ;;  %v4710_v41 = vld [vmem:[#allocation19_spill] sm:$0xff]  ;;  %v4713_v13 = vld [vmem:[#allocation60_spill] sm:$0xff]  ;;  %v4715_v53 = vld [vmem:[#allocation57_spill] sm:$0xff] }
 0x309   :  { %2537 = vmatpush.msra.mxu1 %v3073_v39  ;;  %v1098_v27 = vadd.f32 %v4705_v43, %v955_v45  ;;  %v1102_v61 = vadd.f32 %v4706_v22, %v961_v11  ;;  %2763 = vmatpush.msra.mxu3 %v3073_v39  ;;  %v4709_v45 = vld [vmem:[#allocation32_spill] sm:$0xff] }
 0x30b   :  { %v1610_v38 = vpop.f32.mrf.mxu0  ;;  %v1195_v46 = vadd.f32 %v4711_v2, %v1098_v27 }
 0x30c   :  { %v1611_v36 = vadd.f32 %v1610_v38, %v1542_v57  ;;  %v1171_v57 = vadd.f32 %v4697_v26, %v1074_v51  ;;  %v1094_v38 = vadd.f32 %v4699_v56, %v949_v14  ;;  %v1664_v14 = vpop.permute.xlu2 %1663 }
 0x30e   :  { %v1222_v42 = vpop.f32.mrf.mxu1  ;;  %v1191_v33 = vadd.f32 %v4704_v59, %v1094_v38 }
 0x30f   :  { %v4131_v40 = vadd.f32 %v1222_v42, %v1126_v37  ;;  %v4690_v37 = vld [vmem:[#allocation29_spill] sm:$0xff]  ;;  %v4693_v42 = vld [vmem:[#allocation34_spill] sm:$0xff] }
 0x310   :  { %v1163_v32 = vadd.f32 %v4690_v37, %v1066_v21  ;;  %v1078_v17 = vadd.f32 %v4693_v42, %v925_v16  ;;  %v4703_v16 = vmov 0.0  }
 0x311   :  { %2682 = vmatpush.msra.mxu2 %v4703_v16  ;;  %2440 = vmatpush.msra.mxu0 %v4703_v16 }
 0x312   :  { %v1175_v10 = vadd.f32 %v4698_v6, %v1078_v17 }
 0x316   :  { %v1647_v24 = vpop.f32.mrf.mxu1 }
 0x317   :  { %v1648_v29 = vadd.f32 %v1647_v24, %v1611_v36  ;;  %v4707_v36 = vld [vmem:[#allocation31_spill] sm:$0xff] }
 0x319   :  { %v1650_v28 = vmul.f32 -0.5, %v1648_v29 }
 0x31b   :  { %v4180_v1 = vperm.slane %v1650_v28, 0  ;;  %v4712_v28 = vld [vmem:[#allocation53_spill] sm:$0xff] }
 0x31c   :  { %v1106_v26 = vadd.f32 %v4712_v28, %v967_v9 }
 0x31d   :  { %v1732_v21 = vadd.f32 %v4180_v1, %v1654_v62  ;;  %v1736_v47 = vadd.f32 %v4180_v1, %v4707_v36  ;;  %v1733_v23 = vadd.f32 %v4180_v1, %v1659_v0  ;;  %v1737_v63 = vadd.f32 %v4180_v1, %v4708_v25 }
 0x31e   :  { %v1734_v58 = vadd.f32 %v4180_v1, %v1664_v14  ;;  %v1738_v11 = vadd.f32 %v4180_v1, %v4709_v45  ;;  %v1735_v24 = vadd.f32 %v4180_v1, %v1669_v60  ;;  %v1739_v31 = vadd.f32 %v4180_v1, %v4710_v41  ;;  %v4717_v14 = vld [vmem:[#allocation56_spill] sm:$0xff] }
 0x31f   :  { %v1748_v37 = vadd.f32 %v1732_v21, %v1163_v32  ;;  %v1752_v62 = vadd.f32 %v1736_v47, %v1179_v4  ;;  %v1749_v29 = vadd.f32 %v1733_v23, %v1167_v52  ;;  %v1753_v3 = vadd.f32 %v1737_v63, %v1183_v35  ;;  %v4718_v63 = vld [vmem:[#allocation58_spill] sm:$0xff] }
 0x320   :  { %v1750_v8 = vadd.f32 %v1734_v58, %v1171_v57  ;;  %v1754_v51 = vadd.f32 %v1738_v11, %v1187_v12  ;;  %v1751_v42 = vadd.f32 %v1735_v24, %v1175_v10  ;;  %v1755_v17 = vadd.f32 %v1739_v31, %v1191_v33  ;;  %v4714_v57 = vld [vmem:[#allocation55_spill] sm:$0xff]  ;;  %v4716_v33 = vld [vmem:[#allocation62_spill] sm:$0xff] }
 0x321   :  { %v1764_v20 = vmin.f32 %v1748_v37, 0.0  ;;  %v1768_v30 = vmin.f32 %v1752_v62, 0.0  ;;  %v1765_v44 = vmin.f32 %v1749_v29, 0.0  ;;  %v1769_v7 = vmin.f32 %v1753_v3, 0.0  ;;  %v4719_v11 = vld [vmem:[#allocation59_spill] sm:$0xff]  ;;  %v4720_v37 = vld [vmem:[#allocation61_spill] sm:$0xff] }
 0x322   :  { %v1766_v6 = vmin.f32 %v1750_v8, 0.0  ;;  %v1770_v56 = vmin.f32 %v1754_v51, 0.0  ;;  %v1740_v52 = vadd.f32 %v4180_v1, %v4713_v13  ;;  %v1199_v4 = vadd.f32 %v4714_v57, %v1102_v61 }
 0x323   :  { %v1780_v38 = vmul.f32 1.442695, %v1764_v20  ;;  %v1788_v39 = vmul.f32 1.442695, %v1768_v30  ;;  %v1782_v32 = vmul.f32 1.442695, %v1765_v44  ;;  %v1741_v35 = vadd.f32 %v4180_v1, %v4091_v5 }
 0x324   :  { %v1790_v10 = vmul.f32 1.442695, %v1769_v7  ;;  %v1767_v18 = vmin.f32 %v1751_v42, 0.0  ;;  %v1203_v12 = vadd.f32 %v4715_v53, %v1106_v26  ;;  %v1771_v16 = vmin.f32 %v1755_v17, 0.0 }
 0x325   :  { %2957 = vpow2.f32 %v1780_v38  ;;  %v1756_v9 = vadd.f32 %v1740_v52, %v1195_v46  ;;  %v1784_v0 = vmul.f32 1.442695, %v1766_v6  ;;  %v1757_v59 = vadd.f32 %v1741_v35, %v1199_v4 }
 0x326   :  { %2959 = vpow2.f32 %v1788_v39  ;;  %v1742_v43 = vadd.f32 %v4180_v1, %v4716_v33  ;;  %v1792_v27 = vmul.f32 1.442695, %v1770_v56  ;;  %v1745_v61 = vadd.f32 %v4180_v1, %v4101_v55 }
 0x327   :  { %2961 = vpow2.f32 %v1782_v32  ;;  %v1772_v22 = vmin.f32 %v1756_v9, 0.0  ;;  %v1110_v5 = vadd.f32 %v4717_v14, %v4162_v54  ;;  %v1786_v60 = vmul.f32 1.442695, %v1767_v18 }
 0x328   :  { %2963 = vpow2.f32 %v1790_v10  ;;  %v1773_v21 = vmin.f32 %v1757_v59, 0.0  ;;  %v1794_v36 = vmul.f32 1.442695, %v1771_v16  ;;  %v4213_v47 = vadd.f32 %v1742_v43, %v1203_v12 }
 0x329   :  { %v1743_v23 = vadd.f32 %v4180_v1, %v4144_v19  ;;  %v4218_v25 = vadd.f32 %v1745_v61, %v4093_v48  ;;  %v1114_v58 = vadd.f32 %v4718_v63, %v4165_v15  ;;  %2965 = vpow2.f32 %v1784_v0 }
 0x32a   :  { %v1796_v55 = vmul.f32 1.442695, %v1772_v22  ;;  %v1207_v54 = vadd.f32 %v4719_v11, %v1110_v5  ;;  %2967 = vpow2.f32 %v1792_v27  ;;  %v1798_v24 = vmul.f32 1.442695, %v1773_v21 }
 0x32b   :  { %v2958_v45 = vpop.eup %2957  ;;  %v4225_v41 = vadd.f32 %v4180_v1, %v4148_v34  ;;  %v4228_v19 = vadd.f32 %v4720_v37, %v1114_v58  ;;  %2969 = vpow2.f32 %v1786_v60  ;;  %v4232_v15 = vadd.f32 %v4180_v1, %v4099_v50 }
 0x32c   :  { %v2960_v31 = vpop.eup %2959  ;;  %v1812_v48 = vmul.f32 %v2958_v45, %v2958_v45  ;;  %2971 = vpow2.f32 %v1794_v36  ;;  %v1774_v3 = vmin.f32 %v4213_v47, 0.0  ;;  %v4235_v8 = vadd.f32 %v1743_v23, %v1207_v54 }
 0x32d   :  { %v2962_v62 = vpop.eup %2961  ;;  %v1816_v29 = vmul.f32 %v2960_v31, %v2960_v31  ;;  %2973 = vpow2.f32 %v1796_v55  ;;  %v1760_v47 = vadd.f32 %v4232_v15, %v4228_v19 }
 0x32e   :  { %v2964_v51 = vpop.eup %2963  ;;  %v1828_v34 = vadd.f32 %v2958_v45, %v1812_v48  ;;  %v1844_v42 = vmul.f32 %v1812_v48, %v1812_v48  ;;  %v1813_v17 = vmul.f32 %v2962_v62, %v2962_v62  ;;  %2975 = vpow2.f32 %v1798_v24 }
 0x32f   :  { %v1832_v20 = vadd.f32 %v2960_v31, %v1816_v29  ;;  %v1848_v30 = vmul.f32 %v1816_v29, %v1816_v29  ;;  %v1817_v44 = vmul.f32 %v2964_v51, %v2964_v51  ;;  %v2966_v7 = vpop.eup %2965 }
 0x330   :  { %v1860_v2 = vadd.f32 %v1844_v42, %v1828_v34  ;;  %v1876_v50 = vmul.f32 %v1844_v42, %v1844_v42  ;;  %v1829_v46 = vadd.f32 %v2962_v62, %v1813_v17  ;;  %v1845_v28 = vmul.f32 %v1813_v17, %v1813_v17  ;;  %v2968_v26 = vpop.eup %2967 }
 0x331   :  { %v1864_v6 = vadd.f32 %v1848_v30, %v1832_v20  ;;  %v1880_v56 = vmul.f32 %v1848_v30, %v1848_v30  ;;  %v1833_v38 = vadd.f32 %v2964_v51, %v1817_v44  ;;  %v1849_v39 = vmul.f32 %v1817_v44, %v1817_v44  ;;  %v2970_v32 = vpop.eup %2969 }
 0x332   :  { %v1892_v13 = vadd.f32 %v1876_v50, %v1860_v2  ;;  %v1908_v52 = vmul.f32 %v1876_v50, %v1876_v50  ;;  %v1861_v57 = vadd.f32 %v1845_v28, %v1829_v46  ;;  %v1877_v4 = vmul.f32 %v1845_v28, %v1845_v28  ;;  %v2972_v10 = vpop.eup %2971 }
 0x333   :  { %v1896_v18 = vadd.f32 %v1880_v56, %v1864_v6  ;;  %v1912_v35 = vmul.f32 %v1880_v56, %v1880_v56  ;;  %v1865_v53 = vadd.f32 %v1849_v39, %v1833_v38  ;;  %v1881_v12 = vmul.f32 %v1849_v39, %v1849_v39  ;;  %v4237_v16 = vpop.eup %2973 }
 0x334   :  { %v1924_v9 = vadd.f32 %v1908_v52, %v1892_v13  ;;  %v1893_v0 = vadd.f32 %v1877_v4, %v1861_v57  ;;  %v1909_v59 = vmul.f32 %v1877_v4, %v1877_v4  ;;  %v1814_v33 = vmul.f32 %v2966_v7, %v2966_v7  ;;  %v4239_v43 = vpop.eup %2975 }
 0x335   :  { %v1928_v27 = vadd.f32 %v1912_v35, %v1896_v18  ;;  %v1897_v22 = vadd.f32 %v1881_v12, %v1865_v53  ;;  %v1913_v61 = vmul.f32 %v1881_v12, %v1881_v12  ;;  %v1818_v14 = vmul.f32 %v2968_v26, %v2968_v26 }
 0x336   :  { %v4241_v5 = vand.u32 4294901760, %v1924_v9  ;;  %v1925_v60 = vadd.f32 %v1909_v59, %v1893_v0  ;;  %v1830_v21 = vadd.f32 %v2966_v7, %v1814_v33  ;;  %v1846_v36 = vmul.f32 %v1814_v33, %v1814_v33 }
 0x337   :  { %v4243_v23 = vand.u32 4294901760, %v1928_v27  ;;  %v1929_v63 = vadd.f32 %v1913_v61, %v1897_v22  ;;  %v1834_v58 = vadd.f32 %v2968_v26, %v1818_v14  ;;  %v1850_v55 = vmul.f32 %v1818_v14, %v1818_v14 }
 0x338   :  { %v4246_v45 = vsub.f32 %v1924_v9, %v4241_v5  ;;  %2345 = vmatmul.f32.vlgmr.msrb.gmra.mxu1 %v4241_v5  ;;  %v4249_v11 = vand.u32 4294901760, %v1925_v60  ;;  %v1862_v54 = vadd.f32 %v1846_v36, %v1830_v21  ;;  %v1878_v24 = vmul.f32 %v1846_v36, %v1846_v36 }
 0x339   :  { %v4252_v31 = vsub.f32 %v1928_v27, %v4243_v23  ;;  %2361 = vmatmul.f32.vlgmr.msrb.gmra.mxu3 %v4243_v23  ;;  %v4255_v37 = vand.u32 4294901760, %v1929_v63  ;;  %v1866_v48 = vadd.f32 %v1850_v55, %v1834_v58  ;;  %v1882_v62 = vmul.f32 %v1850_v55, %v1850_v55 }
 0x33a   :  { %v2137_v29 = vand.u32 4294901760, %v4246_v45  ;;  %v4259_v51 = vsub.f32 %v1925_v60, %v4249_v11  ;;  %v1894_v34 = vadd.f32 %v1878_v24, %v1862_v54  ;;  %v1910_v42 = vmul.f32 %v1878_v24, %v1878_v24 }
 0x33b   :  { %v2169_v17 = vand.u32 4294901760, %v4252_v31  ;;  %v4263_v20 = vsub.f32 %v1929_v63, %v4255_v37  ;;  %v1898_v30 = vadd.f32 %v1882_v62, %v1866_v48  ;;  %v1914_v44 = vmul.f32 %v1882_v62, %v1882_v62 }
 0x33c   :  { %v2138_v7 = vsub.f32 %v4246_v45, %v2137_v29  ;;  %v1926_v2 = vadd.f32 %v1910_v42, %v1894_v34  ;;  %v1815_v50 = vmul.f32 %v2970_v32, %v2970_v32  ;;  %v1800_v46 = vmul.f32 1.442695, %v1774_v3 }
 0x33d   :  { %v2170_v28 = vsub.f32 %v4252_v31, %v2169_v17  ;;  %v2145_v26 = vand.u32 4294901760, %v4259_v51  ;;  %v1930_v6 = vadd.f32 %v1914_v44, %v1898_v30  ;;  %v1819_v56 = vmul.f32 %v2972_v10, %v2972_v10 }
 0x33e   :  { %v2139_v38 = vand.u32 4294901760, %v2138_v7  ;;  %v2177_v39 = vand.u32 4294901760, %v4263_v20  ;;  %v4275_v13 = vand.u32 4294901760, %v1926_v2  ;;  %v1831_v52 = vadd.f32 %v2970_v32, %v1815_v50 }
 0x33f   :  { %v2171_v57 = vand.u32 4294901760, %v2170_v28  ;;  %v4277_v4 = vand.u32 4294901760, %v1930_v6  ;;  %v1847_v18 = vmul.f32 %v1815_v50, %v1815_v50  ;;  %v1835_v35 = vadd.f32 %v2972_v10, %v1819_v56 }
 0x340   :  { %2140 = vmatmul.f32.vlgmr.msrb.gmra.mxu0 %v2139_v38  ;;  %2349 = vmatmul.f32.gmra.mxu1 %v4249_v11  ;;  %v4283_v3 = vsub.f32 %v1926_v2, %v4275_v13  ;;  %v1851_v53 = vmul.f32 %v1819_v56, %v1819_v56  ;;  %v1775_v12 = vmin.f32 %v4235_v8, 0.0  ;;  %v2146_v32 = vsub.f32 %v4259_v51, %v2145_v26 }
 0x341   :  { %2172 = vmatmul.f32.vlgmr.msrb.gmra.mxu2 %v2171_v57  ;;  %2365 = vmatmul.f32.gmra.mxu3 %v4255_v37  ;;  %v1863_v9 = vadd.f32 %v1847_v18, %v1831_v52  ;;  %v1879_v0 = vmul.f32 %v1847_v18, %v1847_v18  ;;  %2977 = vpow2.f32 %v1800_v46  ;;  %v2178_v19 = vsub.f32 %v4263_v20, %v2177_v39 }
 0x342   :  { %v1867_v15 = vadd.f32 %v1851_v53, %v1835_v35  ;;  %v1883_v59 = vmul.f32 %v1851_v53, %v1851_v53  ;;  %v1820_v10 = vmul.f32 %v4237_v16, %v4237_v16  ;;  %v4296_v8 = vsub.f32 %v1930_v6, %v4277_v4 }
 0x343   :  { %v1895_v33 = vadd.f32 %v1879_v0, %v1863_v9  ;;  %v1911_v27 = vmul.f32 %v1879_v0, %v1879_v0  ;;  %v1821_v22 = vmul.f32 %v4239_v43, %v4239_v43  ;;  %v2153_v61 = vand.u32 4294901760, %v4283_v3  ;;  %v1729_v9 = vpop.permute.xlu1 %1728 }
 0x344   :  { %v1899_v14 = vadd.f32 %v1883_v59, %v1867_v15  ;;  %v1915_v60 = vmul.f32 %v1883_v59, %v1883_v59  ;;  %v1836_v21 = vadd.f32 %v4237_v16, %v1820_v10  ;;  %v1852_v63 = vmul.f32 %v1820_v10, %v1820_v10 }
 0x345   :  { %v1927_v36 = vadd.f32 %v1911_v27, %v1895_v33  ;;  %v1837_v58 = vadd.f32 %v4239_v43, %v1821_v22  ;;  %v1802_v55 = vmul.f32 1.442695, %v1775_v12  ;;  %v2147_v54 = vand.u32 4294901760, %v2146_v32 }
 0x346   :  { %v2179_v24 = vand.u32 4294901760, %v2178_v19  ;;  %v1931_v48 = vadd.f32 %v1915_v60, %v1899_v14  ;;  %v1853_v62 = vmul.f32 %v1821_v22, %v1821_v22  ;;  %v2185_v42 = vand.u32 4294901760, %v4296_v8 }
 0x347   :  { %v2978_v34 = vpop.eup %2977  ;;  %v4304_v30 = vand.u32 4294901760, %v1927_v36  ;;  %v1868_v44 = vadd.f32 %v1852_v63, %v1836_v21  ;;  %v1884_v7 = vmul.f32 %v1852_v63, %v1852_v63  ;;  %v2154_v16 = vsub.f32 %v4283_v3, %v2153_v61 }
 0x348   :  { %2148 = vmatmul.f32.gmra.mxu0 %v2147_v54  ;;  %2353 = vmatmul.f32.gmra.mxu1 %v4275_v13  ;;  %v4310_v43 = vand.u32 4294901760, %v1931_v48  ;;  %v1869_v2 = vadd.f32 %v1853_v62, %v1837_v58  ;;  %v1885_v28 = vmul.f32 %v1853_v62, %v1853_v62  ;;  %v1776_v6 = vmin.f32 %v1760_v47, 0.0 }
 0x349   :  { %2180 = vmatmul.f32.gmra.mxu2 %v2179_v24  ;;  %2369 = vmatmul.f32.gmra.mxu3 %v4277_v4  ;;  %v1900_v50 = vadd.f32 %v1884_v7, %v1868_v44  ;;  %v1916_v46 = vmul.f32 %v1884_v7, %v1884_v7  ;;  %v4314_v56 = vsub.f32 %v1927_v36, %v4304_v30  ;;  %2979 = vpow2.f32 %v1802_v55 }
 0x34a   :  { %v1822_v38 = vmul.f32 %v2978_v34, %v2978_v34  ;;  %v2186_v52 = vsub.f32 %v4296_v8, %v2185_v42  ;;  %v4320_v57 = vsub.f32 %v1931_v48, %v4310_v43  ;;  %v1762_v35 = vadd.f32 %v4225_v41, %v4097_v49 }
 0x34b   :  { %v1932_v18 = vadd.f32 %v1916_v46, %v1900_v50  ;;  %v2155_v53 = vand.u32 4294901760, %v2154_v16  ;;  %v1901_v12 = vadd.f32 %v1885_v28, %v1869_v2  ;;  %v1917_v32 = vmul.f32 %v1885_v28, %v1885_v28 }
 0x34c   :  { %v1804_v47 = vmul.f32 1.442695, %v1776_v6  ;;  %v2161_v0 = vand.u32 4294901760, %v4314_v56  ;;  %v1838_v15 = vadd.f32 %v2978_v34, %v1822_v38  ;;  %v1854_v59 = vmul.f32 %v1822_v38, %v1822_v38 }
 0x34d   :  { %v4325_v19 = vand.u32 4294901760, %v1932_v18  ;;  %v2187_v10 = vand.u32 4294901760, %v2186_v52  ;;  %v2193_v33 = vand.u32 4294901760, %v4320_v57  ;;  %v1747_v27 = vadd.f32 %v4180_v1, %v1729_v9 }
 0x34e   :  { %v1933_v49 = vadd.f32 %v1917_v32, %v1901_v12  ;;  %2981 = vpow2.f32 %v1804_v47  ;;  %v1777_v41 = vmin.f32 %v4218_v25, 0.0  ;;  %v2162_v60 = vsub.f32 %v4314_v56, %v2161_v0 }
 0x34f   :  { %v2980_v22 = vpop.eup %2979  ;;  %v1763_v14 = vadd.f32 %v1747_v27, %v4131_v40  ;;  %v4337_v21 = vsub.f32 %v1932_v18, %v4325_v19  ;;  %v1870_v1 = vadd.f32 %v1854_v59, %v1838_v15  ;;  %v1886_v36 = vmul.f32 %v1854_v59, %v1854_v59 }
 0x350   :  { %2156 = vmatmul.f32.gmra.mxu0 %v2155_v53  ;;  %2357 = vmatmul.f32.gmra.mxu1 %v4304_v30  ;;  %v2194_v63 = vsub.f32 %v4320_v57, %v2193_v33  ;;  %v1823_v58 = vmul.f32 %v2980_v22, %v2980_v22  ;;  %v4342_v55 = vand.u32 4294901760, %v1933_v49  ;;  %v1806_v54 = vmul.f32 1.442695, %v1777_v41 }
 0x351   :  { %2188 = vmatmul.f32.gmra.mxu2 %v2187_v10  ;;  %2373 = vmatmul.f32.gmra.mxu3 %v4310_v43  ;;  %v2163_v25 = vand.u32 4294901760, %v2162_v60  ;;  %v2201_v40 = vand.u32 4294901760, %v4337_v21  ;;  %v1902_v24 = vadd.f32 %v1886_v36, %v1870_v1  ;;  %v1918_v48 = vmul.f32 %v1886_v36, %v1886_v36 }
 0x352   :  { %v2195_v34 = vand.u32 4294901760, %v2194_v63  ;;  %v1839_v44 = vadd.f32 %v2980_v22, %v1823_v58  ;;  %v1855_v7 = vmul.f32 %v1823_v58, %v1823_v58  ;;  %2983 = vpow2.f32 %v1806_v54 }
 0x353   :  { %v1778_v16 = vmin.f32 %v1762_v35, 0.0  ;;  %v2202_v2 = vsub.f32 %v4337_v21, %v2201_v40  ;;  %v4352_v50 = vsub.f32 %v1933_v49, %v4342_v55  ;;  %v1934_v46 = vadd.f32 %v1918_v48, %v1902_v24 }
 0x354   :  { %v2982_v62 = vpop.eup %2981  ;;  %v1871_v28 = vadd.f32 %v1855_v7, %v1839_v44  ;;  %v1887_v6 = vmul.f32 %v1855_v7, %v1855_v7  ;;  %v1779_v10 = vmin.f32 %v1763_v14, 0.0 }
 0x355   :  { %v1824_v38 = vmul.f32 %v2982_v62, %v2982_v62  ;;  %v1808_v52 = vmul.f32 1.442695, %v1778_v16  ;;  %v2203_v18 = vand.u32 4294901760, %v2202_v2  ;;  %v4355_v53 = vand.u32 4294901760, %v1934_v46 }
 0x356   :  { %v1903_v32 = vadd.f32 %v1887_v6, %v1871_v28  ;;  %v1919_v35 = vmul.f32 %v1887_v6, %v1887_v6 }
 0x357   :  { %v1840_v47 = vadd.f32 %v2982_v62, %v1824_v38  ;;  %v1856_v9 = vmul.f32 %v1824_v38, %v1824_v38  ;;  %2985 = vpow2.f32 %v1808_v52  ;;  %v4365_v27 = vsub.f32 %v1934_v46, %v4355_v53 }
 0x358   :  { %2164 = vmatmul.f32.gmra.mxu0 %v2163_v25  ;;  %2541 = vmatmul.f32.vlgmr.msra.gmra.mxu1 %v2137_v29  ;;  %v2209_v29 = vand.u32 4294901760, %v4352_v50  ;;  %v2984_v12 = vpop.eup %2983  ;;  %v1935_v22 = vadd.f32 %v1919_v35, %v1903_v32 }
 0x359   :  { %2196 = vmatmul.f32.gmra.mxu2 %v2195_v34  ;;  %2377 = vmatmul.f32.gmra.mxu3 %v4325_v19  ;;  %v1825_v59 = vmul.f32 %v2984_v12, %v2984_v12  ;;  %v1872_v49 = vadd.f32 %v1856_v9, %v1840_v47  ;;  %v1888_v41 = vmul.f32 %v1856_v9, %v1856_v9  ;;  %v2217_v63 = vand.u32 4294901760, %v4365_v27 }
 0x35a   :  { %v2210_v15 = vsub.f32 %v4352_v50, %v2209_v29  ;;  %v4368_v58 = vand.u32 4294901760, %v1935_v22 }
 0x35b   :  { %v1841_v60 = vadd.f32 %v2984_v12, %v1825_v59  ;;  %v1857_v1 = vmul.f32 %v1825_v59, %v1825_v59  ;;  %v1904_v54 = vadd.f32 %v1888_v41, %v1872_v49  ;;  %v1920_v25 = vmul.f32 %v1888_v41, %v1888_v41 }
 0x35c   :  { %v2218_v62 = vsub.f32 %v4365_v27, %v2217_v63  ;;  %v4378_v34 = vsub.f32 %v1935_v22, %v4368_v58 }
 0x35d   :  { %v2986_v36 = vpop.eup %2985  ;;  %v1873_v14 = vadd.f32 %v1857_v1, %v1841_v60  ;;  %v1889_v24 = vmul.f32 %v1857_v1, %v1857_v1  ;;  %v1936_v44 = vadd.f32 %v1920_v25, %v1904_v54 }
 0x35e   :  { %v1826_v48 = vmul.f32 %v2986_v36, %v2986_v36  ;;  %v2225_v46 = vand.u32 4294901760, %v4378_v34 }
 0x35f   :  { %v1905_v7 = vadd.f32 %v1889_v24, %v1873_v14  ;;  %v4381_v28 = vand.u32 4294901760, %v1936_v44 }
 0x360   :  { %2443 = vmatmul.f32.vlgmr.msra.gmra.mxu0 %v4246_v45  ;;  %2547 = vmatmul.f32.gmra.mxu1 %v2145_v26  ;;  %v2211_v45 = vand.u32 4294901760, %v2210_v15  ;;  %v1810_v26 = vmul.f32 1.442695, %v1779_v10  ;;  %v1842_v16 = vadd.f32 %v2986_v36, %v1826_v48  ;;  %v1858_v2 = vmul.f32 %v1826_v48, %v1826_v48 }
 0x361   :  { %2204 = vmatmul.f32.gmra.mxu2 %v2203_v18  ;;  %2381 = vmatmul.f32.gmra.mxu3 %v4342_v55  ;;  %v2226_v12 = vsub.f32 %v4378_v34, %v2225_v46  ;;  %v4391_v32 = vsub.f32 %v1936_v44, %v4381_v28 }
 0x362   :  { %2987 = vpow2.f32 %v1810_v26  ;;  %v1874_v52 = vadd.f32 %v1858_v2, %v1842_v16  ;;  %v1890_v18 = vmul.f32 %v1858_v2, %v1858_v2 }
 0x363   :  { %v2227_v15 = vand.u32 4294901760, %v2226_v12 }
 0x364   :  { %v1922_v9 = vmul.f32 %v1890_v18, %v1890_v18 }
 0x368   :  { %2448 = vmatmul.f32.gmra.mxu0 %v4259_v51  ;;  %2553 = vmatmul.f32.gmra.mxu1 %v2153_v61  ;;  %v1921_v51 = vmul.f32 %v1889_v24, %v1889_v24  ;;  %v2219_v61 = vand.u32 4294901760, %v2218_v62  ;;  %v2988_v6 = vpop.eup %2987 }
 0x369   :  { %2212 = vmatmul.f32.gmra.mxu2 %v2211_v45  ;;  %2385 = vmatmul.f32.gmra.mxu3 %v4355_v53  ;;  %v1827_v35 = vmul.f32 %v2988_v6, %v2988_v6 }
 0x36a   :  { %v1937_v38 = vadd.f32 %v1921_v51, %v1905_v7 }
 0x36b   :  { %v1843_v59 = vadd.f32 %v2988_v6, %v1827_v35  ;;  %v1859_v10 = vmul.f32 %v1827_v35, %v1827_v35 }
 0x36c   :  { %v4393_v47 = vand.u32 4294901760, %v1937_v38 }
 0x36d   :  { %v1875_v45 = vadd.f32 %v1859_v10, %v1843_v59  ;;  %v1891_v60 = vmul.f32 %v1859_v10, %v1859_v10 }
 0x36e   :  { %v4402_v41 = vsub.f32 %v1937_v38, %v4393_v47 }
 0x36f   :  { %v1923_v54 = vmul.f32 %v1891_v60, %v1891_v60 }
 0x370   :  { %2453 = vmatmul.f32.gmra.mxu0 %v4283_v3  ;;  %2559 = vmatmul.f32.gmra.mxu1 %v2161_v0  ;;  %v1906_v3 = vadd.f32 %v1890_v18, %v1874_v52  ;;  %v2233_v0 = vand.u32 4294901760, %v4391_v32  ;;  %v2241_v36 = vand.u32 4294901760, %v4402_v41 }
 0x371   :  { %2220 = vmatmul.f32.gmra.mxu2 %v2219_v61  ;;  %2389 = vmatmul.f32.gmra.mxu3 %v4368_v58 }
 0x372   :  { %v1938_v22 = vadd.f32 %v1922_v9, %v1906_v3  ;;  %v2234_v49 = vsub.f32 %v4391_v32, %v2233_v0 }
 0x374   :  { %v4404_v1 = vand.u32 4294901760, %v1938_v22  ;;  %v2235_v26 = vand.u32 4294901760, %v2234_v49 }
 0x376   :  { %v4413_v25 = vsub.f32 %v1938_v22, %v4404_v1 }
 0x378   :  { %2458 = vmatmul.f32.gmra.mxu0 %v4314_v56  ;;  %2565 = vmatmul.f32.gmra.mxu1 %v2169_v17  ;;  %v1907_v56 = vadd.f32 %v1891_v60, %v1875_v45  ;;  %v2242_v17 = vsub.f32 %v4402_v41, %v2241_v36  ;;  %v2249_v48 = vand.u32 4294901760, %v4413_v25 }
 0x379   :  { %2228 = vmatmul.f32.gmra.mxu2 %v2227_v15  ;;  %2393 = vmatmul.f32.gmra.mxu3 %v4381_v28 }
 0x37a   :  { %v1939_v14 = vadd.f32 %v1923_v54, %v1907_v56  ;;  %v2243_v24 = vand.u32 4294901760, %v2242_v17 }
 0x37c   :  { %v4416_v62 = vand.u32 4294901760, %v1939_v14 }
 0x380   :  { %2463 = vmatmul.f32.gmra.mxu0 %v4252_v31  ;;  %2571 = vmatmul.f32.gmra.mxu1 %v2177_v39  ;;  %v2250_v31 = vsub.f32 %v4413_v25, %v2249_v48  ;;  %v4424_v39 = vsub.f32 %v1939_v14, %v4416_v62 }
 0x381   :  { %2236 = vmatmul.f32.gmra.mxu2 %v2235_v26  ;;  %2397 = vmatmul.f32.gmra.mxu3 %v4393_v47 }
 0x382   :  { %v2251_v44 = vand.u32 4294901760, %v2250_v31  ;;  %v2257_v7 = vand.u32 4294901760, %v4424_v39 }
 0x388   :  { %2468 = vmatmul.f32.gmra.mxu0 %v4263_v20  ;;  %2577 = vmatmul.f32.gmra.mxu1 %v2185_v42  ;;  %v2258_v20 = vsub.f32 %v4424_v39, %v2257_v7 }
 0x389   :  { %2244 = vmatmul.f32.gmra.mxu2 %v2243_v24  ;;  %2401 = vmatmul.f32.gmra.mxu3 %v4404_v1 }
 0x38a   :  { %v2259_v42 = vand.u32 4294901760, %v2258_v20 }
 0x390   :  { %2473 = vmatmul.f32.gmra.mxu0 %v4296_v8  ;;  %2583 = vmatmul.f32.gmra.mxu1 %v2193_v33 }
 0x391   :  { %2252 = vmatmul.f32.gmra.mxu2 %v2251_v44  ;;  %2405 = vmatmul.f32.gmra.mxu3 %v4416_v62 }
 0x398   :  { %2478 = vmatmul.f32.gmra.mxu0 %v4320_v57  ;;  %2589 = vmatmul.f32.gmra.mxu1 %v2201_v40 }
 0x399   :  { %2260 = vmatmul.f32.gmra.mxu2 %v2259_v42  ;;  %2765 = vmatmul.f32.vlgmr.msra.gmra.mxu3 %v4241_v5 }
 0x3a0   :  { %2483 = vmatmul.f32.gmra.mxu0 %v4337_v21  ;;  %2595 = vmatmul.f32.gmra.mxu1 %v2209_v29 }
 0x3a1   :  { %2684 = vmatmul.f32.vlgmr.msra.gmra.mxu2 %v4241_v5  ;;  %2769 = vmatmul.f32.gmra.mxu3 %v4249_v11 }
 0x3a8   :  { %2488 = vmatmul.f32.gmra.mxu0 %v4352_v50  ;;  %2601 = vmatmul.f32.gmra.mxu1 %v2217_v63 }
 0x3a9   :  { %2688 = vmatmul.f32.gmra.mxu2 %v4249_v11  ;;  %2773 = vmatmul.f32.gmra.mxu3 %v4275_v13 }
 0x3b0   :  { %2493 = vmatmul.f32.gmra.mxu0 %v4365_v27  ;;  %2607 = vmatmul.f32.gmra.mxu1 %v2225_v46 }
 0x3b1   :  { %2692 = vmatmul.f32.gmra.mxu2 %v4275_v13  ;;  %2777 = vmatmul.f32.gmra.mxu3 %v4304_v30 }
 0x3b5   :  { %v2346_v5 = vpop.f32.mrf.mxu1 }
 0x3b8   :  { %2498 = vmatmul.f32.gmra.mxu0 %v4378_v34  ;;  %2613 = vmatmul.f32.gmra.mxu1 %v2233_v0 }
 0x3b9   :  { %2696 = vmatmul.f32.gmra.mxu2 %v4304_v30  ;;  %2781 = vmatmul.f32.gmra.mxu3 %v4243_v23 }
 0x3bc   :  { %v2362_v11 = vpop.f32.mrf.mxu3 }
 0x3bd   :  { %v2141_v8 = vpop.f32.mrf.mxu0  ;;  %v2350_v33 = vpop.f32.mrf.mxu1 }
 0x3be   :  { %v2347_v57 = vadd.f32 %v2346_v5, %v2141_v8 }
 0x3c0   :  { %2503 = vmatmul.f32.gmra.mxu0 %v4391_v32  ;;  %2619 = vmatmul.f32.gmra.mxu1 %v2241_v36 }
 0x3c1   :  { %2700 = vmatmul.f32.gmra.mxu2 %v4243_v23  ;;  %2785 = vmatmul.f32.gmra.mxu3 %v4255_v37 }
 0x3c4   :  { %v2173_v13 = vpop.f32.mrf.mxu2  ;;  %v2366_v21 = vpop.f32.mrf.mxu3 }
 0x3c5   :  { %v2363_v40 = vadd.f32 %v2362_v11, %v2173_v13  ;;  %v2149_v50 = vpop.f32.mrf.mxu0  ;;  %v2354_v30 = vpop.f32.mrf.mxu1 }
 0x3c6   :  { %v2351_v29 = vadd.f32 %v2350_v33, %v2149_v50 }
 0x3c8   :  { %2508 = vmatmul.f32.gmra.mxu0 %v4402_v41  ;;  %2625 = vmatmul.f32.gmra.mxu1 %v2249_v48 }
 0x3c9   :  { %2704 = vmatmul.f32.gmra.mxu2 %v4255_v37  ;;  %2789 = vmatmul.f32.gmra.mxu3 %v4277_v4 }
 0x3cc   :  { %v2181_v27 = vpop.f32.mrf.mxu2  ;;  %v2370_v63 = vpop.f32.mrf.mxu3 }
 0x3cd   :  { %v4460_v34 = vadd.f32 %v2366_v21, %v2181_v27  ;;  %v2157_v23 = vpop.f32.mrf.mxu0  ;;  %v2358_v61 = vpop.f32.mrf.mxu1 }
 0x3ce   :  { %v2355_v51 = vadd.f32 %v2354_v30, %v2157_v23 }
 0x3d0   :  { %2513 = vmatmul.f32.gmra.mxu0 %v4413_v25  ;;  %2631 = vmatmul.f32.gmra.mxu1 %v2257_v7 }
 0x3d1   :  { %2708 = vmatmul.f32.gmra.mxu2 %v4277_v4  ;;  %2793 = vmatmul.f32.gmra.mxu3 %v4310_v43 }
 0x3d4   :  { %v2189_v16 = vpop.f32.mrf.mxu2  ;;  %v2374_v2 = vpop.f32.mrf.mxu3 }
 0x3d5   :  { %v4465_v37 = vadd.f32 %v2370_v63, %v2189_v16  ;;  %v2165_v46 = vpop.f32.mrf.mxu0  ;;  %v2542_v59 = vpop.f32.mrf.mxu1 }
 0x3d6   :  { %v2359_v6 = vadd.f32 %v2358_v61, %v2165_v46 }
 0x3d8   :  { %2518 = vmatmul.f32.gmra.mxu0 %v4424_v39 }
 0x3d9   :  { %2712 = vmatmul.f32.gmra.mxu2 %v4310_v43  ;;  %2797 = vmatmul.f32.gmra.mxu3 %v4325_v19 }
 0x3dc   :  { %v2197_v38 = vpop.f32.mrf.mxu2  ;;  %v2378_v52 = vpop.f32.mrf.mxu3 }
 0x3dd   :  { %v4470_v18 = vadd.f32 %v2374_v2, %v2197_v38  ;;  %v2444_v4 = vpop.f32.mrf.mxu0  ;;  %v2548_v36 = vpop.f32.mrf.mxu1 }
 0x3de   :  { %v2445_v12 = vadd.f32 %v2444_v4, %v2347_v57 }
 0x3e1   :  { %2716 = vmatmul.f32.gmra.mxu2 %v4325_v19  ;;  %2801 = vmatmul.f32.gmra.mxu3 %v4342_v55 }
 0x3e4   :  { %v2205_v32 = vpop.f32.mrf.mxu2  ;;  %v2382_v35 = vpop.f32.mrf.mxu3 }
 0x3e5   :  { %v4474_v3 = vadd.f32 %v2378_v52, %v2205_v32  ;;  %v2449_v9 = vpop.f32.mrf.mxu0  ;;  %v2554_v24 = vpop.f32.mrf.mxu1 }
 0x3e6   :  { %v2450_v15 = vadd.f32 %v2449_v9, %v2351_v29 }
 0x3e8   :  { %v2549_v14 = vadd.f32 %v2548_v36, %v2450_v15 }
 0x3e9   :  { %2720 = vmatmul.f32.gmra.mxu2 %v4342_v55  ;;  %2805 = vmatmul.f32.gmra.mxu3 %v4355_v53  ;;  %v2543_v55 = vadd.f32 %v2542_v59, %v2445_v12 }
 0x3ec   :  { %v2213_v43 = vpop.f32.mrf.mxu2  ;;  %v2386_v0 = vpop.f32.mrf.mxu3 }
 0x3ed   :  { %v4478_v10 = vadd.f32 %v2382_v35, %v2213_v43  ;;  %v2454_v22 = vpop.f32.mrf.mxu0 }
 0x3ee   :  { %v2455_v49 = vadd.f32 %v2454_v22, %v2355_v51 }
 0x3f0   :  { %v2555_v44 = vadd.f32 %v2554_v24, %v2455_v49 }
 0x3f1   :  { %2724 = vmatmul.f32.gmra.mxu2 %v4355_v53  ;;  %2809 = vmatmul.f32.gmra.mxu3 %v4368_v58 }
 0x3f4   :  { %v2221_v19 = vpop.f32.mrf.mxu2  ;;  %v2390_v41 = vpop.f32.mrf.mxu3 }
 0x3f5   :  { %v4482_v45 = vadd.f32 %v2386_v0, %v2221_v19  ;;  %v2459_v60 = vpop.f32.mrf.mxu0 }
 0x3f6   :  { %v2460_v26 = vadd.f32 %v2459_v60, %v2359_v6 }
 0x3f9   :  { %2728 = vmatmul.f32.gmra.mxu2 %v4368_v58  ;;  %2813 = vmatmul.f32.gmra.mxu3 %v4381_v28  ;;  %v2560_v58 = vpop.f32.mrf.mxu1 }
 0x3fa   :  { %v2561_v5 = vadd.f32 %v2560_v58, %v2460_v26 }
 0x3fc   :  { %v2229_v56 = vpop.f32.mrf.mxu2  ;;  %v2394_v54 = vpop.f32.mrf.mxu3 }
 0x3fd   :  { %v4486_v17 = vadd.f32 %v2390_v41, %v2229_v56  ;;  %v2464_v25 = vpop.f32.mrf.mxu0 }
 0x3fe   :  { %v2465_v53 = vadd.f32 %v2464_v25, %v2363_v40 }
 0x401   :  { %2732 = vmatmul.f32.gmra.mxu2 %v4381_v28  ;;  %2817 = vmatmul.f32.gmra.mxu3 %v4393_v47  ;;  %v2566_v8 = vpop.f32.mrf.mxu1 }
 0x402   :  { %v2567_v33 = vadd.f32 %v2566_v8, %v2465_v53 }
 0x404   :  { %v2237_v48 = vpop.f32.mrf.mxu2  ;;  %v2398_v31 = vpop.f32.mrf.mxu3 }
 0x405   :  { %v4490_v39 = vadd.f32 %v2394_v54, %v2237_v48  ;;  %v2469_v23 = vpop.f32.mrf.mxu0 }
 0x406   :  { %v2470_v54 = vadd.f32 %v2469_v23, %v4460_v34 }
 0x409   :  { %2736 = vmatmul.f32.gmra.mxu2 %v4393_v47  ;;  %2821 = vmatmul.f32.gmra.mxu3 %v4404_v1  ;;  %v2572_v52 = vpop.f32.mrf.mxu1 }
 0x40a   :  { %v2573_v48 = vadd.f32 %v2572_v52, %v2470_v54 }
 0x40c   :  { %v2245_v7 = vpop.f32.mrf.mxu2  ;;  %v2402_v20 = vpop.f32.mrf.mxu3 }
 0x40d   :  { %v4494_v42 = vadd.f32 %v2398_v31, %v2245_v7  ;;  %v2474_v32 = vpop.f32.mrf.mxu0 }
 0x411   :  { %2740 = vmatmul.f32.gmra.mxu2 %v4404_v1  ;;  %2825 = vmatmul.f32.gmra.mxu3 %v4416_v62  ;;  %v2578_v22 = vpop.f32.mrf.mxu1 }
 0x414   :  { %v2253_v28 = vpop.f32.mrf.mxu2  ;;  %v2406_v11 = vpop.f32.mrf.mxu3 }
 0x415   :  { %v4498_v57 = vadd.f32 %v2402_v20, %v2253_v28  ;;  %v2479_v41 = vpop.f32.mrf.mxu0 }
 0x419   :  { %2744 = vmatmul.f32.gmra.mxu2 %v4416_v62  ;;  %v2584_v53 = vpop.f32.mrf.mxu1 }
 0x41c   :  { %v2261_v47 = vpop.f32.mrf.mxu2  ;;  %v2766_v13 = vpop.f32.mrf.mxu3 }
 0x41d   :  { %v4501_v21 = vadd.f32 %v2406_v11, %v2261_v47  ;;  %v2484_v7 = vpop.f32.mrf.mxu0 }
 0x421   :  { %v2590_v8 = vpop.f32.mrf.mxu1 }
 0x424   :  { %v2685_v40 = vpop.f32.mrf.mxu2  ;;  %v2770_v50 = vpop.f32.mrf.mxu3 }
 0x425   :  { %v2686_v29 = vadd.f32 %v2685_v40, %v2543_v55 }
 0x427   :  { %v2767_v30 = vadd.f32 %v2766_v13, %v2686_v29  ;;  %v2480_v29 = vadd.f32 %v2479_v41, %v4470_v18 }
 0x429   :  { %v2830_v51 = vmul.f32 0.125, %v2767_v30  ;;  %v2489_v30 = vpop.f32.mrf.mxu0  ;;  %v2585_v23 = vadd.f32 %v2584_v53, %v2480_v29 }
 0x42b   :  { %v2847_v61 = vsel %vm267_vm6, %v2830_v51, 0.0 }
 0x42c   :  { %v2689_v27 = vpop.f32.mrf.mxu2  ;;  %v2774_v1 = vpop.f32.mrf.mxu3 }
 0x42d   :  { %v2690_v63 = vadd.f32 %v2689_v27, %v2549_v14 }
 0x42f   :  { %v2771_v16 = vadd.f32 %v2770_v50, %v2690_v63 }
 0x431   :  { %v2831_v2 = vmul.f32 -0.125, %v2771_v16 }
 0x433   :  { %v2848_v46 = vsel %vm267_vm6, %v2831_v2, 0.0 }
 0x434   :  { %v2849_v62 = vadd.f32 %v2848_v46, %v2847_v61  ;;  %v2693_v6 = vpop.f32.mrf.mxu2  ;;  %v2778_v38 = vpop.f32.mrf.mxu3  ;;  %v2485_v46 = vadd.f32 %v2484_v7, %v4474_v3 }
 0x435   :  { %v2694_v4 = vadd.f32 %v2693_v6, %v2555_v44  ;;  %v2596_v61 = vpop.f32.mrf.mxu1  ;;  %v2494_v6 = vpop.f32.mrf.mxu0 }
 0x437   :  { %v2775_v12 = vadd.f32 %v2774_v1, %v2694_v4  ;;  %v2591_v4 = vadd.f32 %v2590_v8, %v2485_v46 }
 0x439   :  { %v2832_v35 = vmul.f32 0.0, %v2775_v12 }
 0x43b   :  { %v2850_v9 = vsel %vm267_vm6, %v2832_v35, 0.0 }
 0x43c   :  { %v2851_v15 = vadd.f32 %v2850_v9, %v2849_v62  ;;  %v2697_v43 = vpop.f32.mrf.mxu2  ;;  %v2782_v0 = vpop.f32.mrf.mxu3  ;;  %v2490_v9 = vadd.f32 %v2489_v30, %v4478_v10 }
 0x43d   :  { %v2698_v59 = vadd.f32 %v2697_v43, %v2561_v5  ;;  %v2475_v5 = vadd.f32 %v2474_v32, %v4465_v37  ;;  %v2602_v43 = vpop.f32.mrf.mxu1 }
 0x43f   :  { %v2779_v49 = vadd.f32 %v2778_v38, %v2698_v59  ;;  %v2579_v47 = vadd.f32 %v2578_v22, %v2475_v5  ;;  %v2499_v59 = vpop.f32.mrf.mxu0 }
 0x441   :  { %v2833_v19 = vmul.f32 0.0, %v2779_v49  ;;  %v2597_v49 = vadd.f32 %v2596_v61, %v2490_v9 }
 0x443   :  { %v2852_v60 = vsel %vm267_vm6, %v2833_v19, 0.0 }
 0x444   :  { %v2853_v26 = vadd.f32 %v2852_v60, %v2851_v15  ;;  %v2701_v55 = vpop.f32.mrf.mxu2  ;;  %v2786_v36 = vpop.f32.mrf.mxu3 }
 0x445   :  { %v2702_v56 = vadd.f32 %v2701_v55, %v2567_v33 }
 0x447   :  { %v2783_v25 = vadd.f32 %v2782_v0, %v2702_v56  ;;  %v2608_v56 = vpop.f32.mrf.mxu1 }
 0x449   :  { %v2834_v14 = vmul.f32 0.0, %v2783_v25 }
 0x44b   :  { %v2854_v24 = vsel %vm267_vm6, %v2834_v14, 0.0  ;;  %v2504_v14 = vpop.f32.mrf.mxu0 }
 0x44c   :  { %v2855_v31 = vadd.f32 %v2854_v24, %v2853_v26  ;;  %v2705_v44 = vpop.f32.mrf.mxu2  ;;  %v2790_v58 = vpop.f32.mrf.mxu3  ;;  %v2495_v26 = vadd.f32 %v2494_v6, %v4482_v45  ;;  %v2505_v8 = vadd.f32 %v2504_v14, %v4490_v39 }
 0x44d   :  { %v2706_v20 = vadd.f32 %v2705_v44, %v2573_v48 }
 0x44e   :  { %v2603_v25 = vadd.f32 %v2602_v43, %v2495_v26 }
 0x44f   :  { %v2787_v28 = vadd.f32 %v2786_v36, %v2706_v20  ;;  %v2614_v5 = vpop.f32.mrf.mxu1 }
 0x451   :  { %v2835_v11 = vmul.f32 0.0, %v2787_v28 }
 0x453   :  { %v2856_v33 = vsel %vm267_vm6, %v2835_v11, 0.0 }
 0x454   :  { %v2857_v34 = vadd.f32 %v2856_v33, %v2855_v31  ;;  %v2709_v13 = vpop.f32.mrf.mxu2  ;;  %v2794_v40 = vpop.f32.mrf.mxu3  ;;  %v2500_v31 = vadd.f32 %v2499_v59, %v4486_v17 }
 0x455   :  { %v2710_v50 = vadd.f32 %v2709_v13, %v2579_v47  ;;  %v2509_v33 = vpop.f32.mrf.mxu0 }
 0x456   :  { %v2609_v20 = vadd.f32 %v2608_v56, %v2500_v31 }
 0x457   :  { %v2791_v27 = vadd.f32 %v2790_v58, %v2710_v50  ;;  %v2615_v50 = vadd.f32 %v2614_v5, %v2505_v8 }
 0x459   :  { %v2836_v1 = vmul.f32 0.0, %v2791_v27  ;;  %v2620_v27 = vpop.f32.mrf.mxu1 }
 0x45b   :  { %v2858_v63 = vsel %vm267_vm6, %v2836_v1, 0.0  ;;  %v2510_v1 = vadd.f32 %v2509_v33, %v4494_v42 }
 0x45c   :  { %v2859_v51 = vadd.f32 %v2858_v63, %v2857_v34  ;;  %v2713_v37 = vpop.f32.mrf.mxu2  ;;  %v2798_v16 = vpop.f32.mrf.mxu3 }
 0x45d   :  { %v2714_v2 = vadd.f32 %v2713_v37, %v2585_v23  ;;  %v2514_v23 = vpop.f32.mrf.mxu0  ;;  %v2621_v39 = vadd.f32 %v2620_v27, %v2510_v1 }
 0x45f   :  { %v2795_v62 = vadd.f32 %v2794_v40, %v2714_v2 }
 0x461   :  { %v2837_v38 = vmul.f32 0.0, %v2795_v62  ;;  %v2515_v62 = vadd.f32 %v2514_v23, %v4498_v57 }
 0x463   :  { %v2860_v52 = vsel %vm267_vm6, %v2837_v38, 0.0  ;;  %v2626_v38 = vpop.f32.mrf.mxu1 }
 0x464   :  { %v2861_v18 = vadd.f32 %v2860_v52, %v2859_v51  ;;  %v2717_v12 = vpop.f32.mrf.mxu2  ;;  %v2802_v32 = vpop.f32.mrf.mxu3 }
 0x465   :  { %v2718_v35 = vadd.f32 %v2717_v12, %v2591_v4  ;;  %v2519_v4 = vpop.f32.mrf.mxu0  ;;  %v2627_v12 = vadd.f32 %v2626_v38, %v2515_v62 }
 0x467   :  { %v2799_v15 = vadd.f32 %v2798_v16, %v2718_v35 }
 0x469   :  { %v2838_v0 = vmul.f32 0.0, %v2799_v15  ;;  %v2520_v15 = vadd.f32 %v2519_v4, %v4501_v21 }
 0x46b   :  { %v2862_v22 = vsel %vm267_vm6, %v2838_v0, 0.0  ;;  %v2632_v59 = vpop.f32.mrf.mxu1 }
 0x46c   :  { %v2863_v3 = vadd.f32 %v2862_v22, %v2861_v18  ;;  %v2721_v19 = vpop.f32.mrf.mxu2  ;;  %v2806_v41 = vpop.f32.mrf.mxu3  ;;  %v2633_v22 = vadd.f32 %v2632_v59, %v2520_v15 }
 0x46d   :  { %v2722_v60 = vadd.f32 %v2721_v19, %v2597_v49 }
 0x46f   :  { %v2803_v55 = vadd.f32 %v2802_v32, %v2722_v60 }
 0x471   :  { %v2839_v36 = vmul.f32 0.0, %v2803_v55 }
 0x473   :  { %v2864_v54 = vsel %vm267_vm6, %v2839_v36, 0.0 }
 0x474   :  { %v2865_v10 = vadd.f32 %v2864_v54, %v2863_v3  ;;  %v2725_v53 = vpop.f32.mrf.mxu2  ;;  %v2810_v48 = vpop.f32.mrf.mxu3 }
 0x475   :  { %v2726_v24 = vadd.f32 %v2725_v53, %v2603_v25 }
 0x477   :  { %v2807_v44 = vadd.f32 %v2806_v41, %v2726_v24 }
 0x479   :  { %v2840_v58 = vmul.f32 0.0, %v2807_v44 }
 0x47b   :  { %v2866_v7 = vsel %vm267_vm6, %v2840_v58, 0.0 }
 0x47c   :  { %v2867_v45 = vadd.f32 %v2866_v7, %v2865_v10  ;;  %v2729_v28 = vpop.f32.mrf.mxu2  ;;  %v2814_v34 = vpop.f32.mrf.mxu3 }
 0x47d   :  { %v2730_v11 = vadd.f32 %v2729_v28, %v2609_v20 }
 0x47f   :  { %v2811_v47 = vadd.f32 %v2810_v48, %v2730_v11 }
 0x481   :  { %v2841_v13 = vmul.f32 0.0, %v2811_v47 }
 0x483   :  { %v2868_v40 = vsel %vm267_vm6, %v2841_v13, 0.0 }
 0x484   :  { %v2869_v29 = vadd.f32 %v2868_v40, %v2867_v45  ;;  %v2733_v17 = vpop.f32.mrf.mxu2  ;;  %v2818_v37 = vpop.f32.mrf.mxu3 }
 0x485   :  { %v2734_v30 = vadd.f32 %v2733_v17, %v2615_v50 }
 0x487   :  { %v2815_v63 = vadd.f32 %v2814_v34, %v2734_v30 }
 0x489   :  { %v2842_v51 = vmul.f32 0.0, %v2815_v63 }
 0x48b   :  { %v2870_v16 = vsel %vm267_vm6, %v2842_v51, 0.0 }
 0x48c   :  { %v2871_v2 = vadd.f32 %v2870_v16, %v2869_v29  ;;  %v2737_v61 = vpop.f32.mrf.mxu2  ;;  %v2822_v42 = vpop.f32.mrf.mxu3 }
 0x48d   :  { %v2738_v46 = vadd.f32 %v2737_v61, %v2621_v39 }
 0x48f   :  { %v2819_v6 = vadd.f32 %v2818_v37, %v2738_v46 }
 0x491   :  { %v2843_v52 = vmul.f32 0.0, %v2819_v6 }
 0x493   :  { %v2872_v18 = vsel %vm267_vm6, %v2843_v52, 0.0 }
 0x494   :  { %v2741_v32 = vpop.f32.mrf.mxu2  ;;  %v2873_v35 = vadd.f32 %v2872_v18, %v2871_v2  ;;  %v2826_v41 = vpop.f32.mrf.mxu3 }
 0x495   :  { %v2742_v9 = vadd.f32 %v2741_v32, %v2627_v12 }
 0x497   :  { %v2823_v43 = vadd.f32 %v2822_v42, %v2742_v9 }
 0x499   :  { %v2844_v0 = vmul.f32 0.0, %v2823_v43 }
 0x49b   :  { %v2874_v49 = vsel %vm267_vm6, %v2844_v0, 0.0 }
 0x49c   :  { %v2745_v57 = vpop.f32.mrf.mxu2  ;;  %v2875_v3 = vadd.f32 %v2874_v49, %v2873_v35 }
 0x49d   :  { %v2746_v19 = vadd.f32 %v2745_v57, %v2633_v22 }
 0x49f   :  { %v2827_v60 = vadd.f32 %v2826_v41, %v2746_v19 }
 0x4a1   :  { %v2845_v26 = vmul.f32 0.0, %v2827_v60 }
 0x4a3   :  { %v2876_v55 = vsel %vm267_vm6, %v2845_v26, 0.0 }
 0x4a4   :  { %v2877_v36 = vadd.f32 %v2876_v55, %v2875_v3 }
 0x4a6   :  { %2878 = vadd.xlane.f32.xlu2 %v2877_v36 }
 0x519   :  { %v2879_v56 = vpop.xlane.xlu2 %2878 }
 0x51a   :  { %v2880_v54 = vrot.slane %v2879_v56, 4 }
 0x51c   :  { %v2881_v25 = vadd.f32 %v2880_v54, %v2879_v56 }
 0x51e   :  { %v2882_v21 = vrot.slane %v2881_v25, 2 }
 0x520   :  { %v2883_v10 = vadd.f32 %v2882_v21, %v2881_v25 }
 0x522   :  { %v2884_v53 = vrot.slane %v2883_v10, 1 }
 0x524   :  { %v2885_v14 = vadd.f32 %v2884_v53, %v2883_v10 }
 0x526   :  { %2940 = vpush %v2885_v14 }
 0x557   :  { %s2941_s7 = spop %2940 }
 0x558   :  { %v2891_v24 = vstv %s2941_s7 }
 0x559   :  { %2892 = vst [vmem:[#allocation8] sm:$0xff] %v2891_v24 }
 0x55a   :  { %2903 = dma.vmem_to_hbm [thread:$0]  %s2899_s6, 128, %s2901_s4, [#allocation9]  }
 0x55b   :  { %3065 = dma.done.wait [#allocation9], 128  }
 0x55c   :  { %3066 = vsyncadd [#allocation9], 4294967168 }
 0x55d   :  { %2908 = vsyncpa [#allocation9], 1 }
 0x55e   :  { %2909 = vsyncmov [#allocation7] }
 0x561   :  { %s2910_s8 = vpop.sfrf %2909 }
 0x562   :  { %p2925_p0 = scmp.ne.s32.totalorder %s2910_s8, 0 }
 0x564   :  { %2914 = shalt.err (%p2925_p0)  }
 0x565   :  { %2916 = vsyncmov [#allocation7 + $0x1] }
 0x568   :  { %s2917_s9 = vpop.sfrf %2916 }
 0x569   :  { %p2926_p1 = scmp.ne.s32.totalorder %s2917_s9, 0 }
 0x56b   :  { %2921 = shalt.err (%p2926_p1)  }

</bundles_post_ra>
